<compile_context>
chip_gen: v5e
topology: v5e:2x2
jax: 0.10.0
libtpu: 0.0.40
codegen_flags: <defaults>
</compile_context>

<pallas_src>
import jax
import jax.numpy as jnp
from jax.experimental import pallas as pl
from jax.experimental.pallas import tpu as pltpu


def _mlp_kernel(x_ref,
                w1_ref, b1_ref,
                w2_ref, b2_ref,
                w3_ref, b3_ref,
                w4_ref, b4_ref,
                o_ref):
    # All four matmuls + activations fused in a single kernel invocation.
    x = x_ref[...]                                                     # (tb, 128)

    h = jnp.dot(x, w1_ref[...], preferred_element_type=jnp.float32)    # (tb, 512)
    h = jnp.maximum(h + b1_ref[...], 0.0)

    h = jnp.dot(h, w2_ref[...], preferred_element_type=jnp.float32)    # (tb, 256)
    h = jnp.maximum(h + b2_ref[...], 0.0)

    h = jnp.dot(h, w3_ref[...], preferred_element_type=jnp.float32)    # (tb, 128)
    h = jnp.maximum(h + b3_ref[...], 0.0)

    # fc4 padded to 128 output lanes (only column 0 is meaningful) so the
    # store is lane-dense and the MXU tile is not degenerate (N=1).
    z = jnp.dot(h, w4_ref[...], preferred_element_type=jnp.float32)    # (tb, 128)
    z = z + b4_ref[...]
    o_ref[...] = jax.nn.sigmoid(z)


def _pick_tile(B):
    """Return (tile_rows, padded_batch).

    Prefers >=2 MXU-friendly tiles (dual-TC on v7x); small batches become a
    single tile padded up to a multiple of 8 sublanes.
    """
    if B >= 256:
        tb = 256 if B >= 1024 else 128
        Bp = ((B + tb - 1) // tb) * tb
        return tb, Bp
    Bp = max(8, ((B + 7) // 8) * 8)
    return Bp, Bp


def discriminator_forward(x, params, *, tb=None):
    """x: [B, 128] float32. params: dict of weights/biases. Returns [B, 1]."""
    B, F = x.shape
    assert F == 128

    if tb is None:
        tb, Bp = _pick_tile(B)
    else:
        Bp = ((B + tb - 1) // tb) * tb

    if Bp != B:
        x = jnp.concatenate(
            [x, jnp.zeros((Bp - B, F), x.dtype)], axis=0)

    w1, b1 = params["w1"], params["b1"]
    w2, b2 = params["w2"], params["b2"]
    w3, b3 = params["w3"], params["b3"]
    w4, b4 = params["w4"], params["b4"]

    # Pad fc4 weights/bias to a full 128-lane output (column 0 is the real one).
    w4p = jnp.zeros((128, 128), jnp.float32).at[:, 0:1].set(w4)
    b4p = jnp.zeros((1, 128), jnp.float32).at[:, 0:1].set(b4)

    def full_spec(shape):
        # Whole-array block, identical for every grid step -> resident in VMEM.
        return pl.BlockSpec(shape, lambda i: (0, 0))

    grid = (Bp // tb,)

    out = pl.pallas_call(
        _mlp_kernel,
        out_shape=jax.ShapeDtypeStruct((Bp, 128), jnp.float32),
        grid_spec=pltpu.PrefetchScalarGridSpec(
            num_scalar_prefetch=0,
            grid=grid,
            in_specs=[
                pl.BlockSpec((tb, 128), lambda i: (i, 0)),   # x tile over batch
                full_spec(w1.shape), full_spec(b1.shape),
                full_spec(w2.shape), full_spec(b2.shape),
                full_spec(w3.shape), full_spec(b3.shape),
                full_spec(w4p.shape), full_spec(b4p.shape),
            ],
            out_specs=pl.BlockSpec((tb, 128), lambda i: (i, 0)),
        ),
        compiler_params=pltpu.CompilerParams(
            dimension_semantics=("parallel",),
        ),
    )(x, w1, b1, w2, b2, w3, b3, w4p, b4p)

    # Keep only the real rows and output column -> (B, 1), matching torch.
    return out[:B, :1]


def init_params(key):
    """Deterministic synthetic init (PyTorch-style uniform bounds 1/sqrt(fan_in))."""
    dims = [(128, 512), (512, 256), (256, 128), (128, 1)]
    params = {}
    keys = jax.random.split(key, 2 * len(dims))
    for idx, (fin, fout) in enumerate(dims):
        bound = 1.0 / jnp.sqrt(fin)
        w = jax.random.uniform(keys[2 * idx], (fin, fout),
                               minval=-bound, maxval=bound, dtype=jnp.float32)
        b = jax.random.uniform(keys[2 * idx + 1], (1, fout),
                               minval=-bound, maxval=bound, dtype=jnp.float32)
        params[f"w{idx + 1}"] = w
        params[f"b{idx + 1}"] = b
    return params


def reference_forward(x, params):
    h = jnp.maximum(x @ params["w1"] + params["b1"], 0.0)
    h = jnp.maximum(h @ params["w2"] + params["b2"], 0.0)
    h = jnp.maximum(h @ params["w3"] + params["b3"], 0.0)
    return jax.nn.sigmoid(h @ params["w4"] + params["b4"])


if __name__ == "__main__":
    key = jax.random.PRNGKey(0)
    pkey, xkey = jax.random.split(key)
    params = init_params(pkey)

    B = 256  # -> tb=128, grid=(2,): two parallel tiles (keeps both v7x TCs busy)
    x = jax.random.normal(xkey, (B, 128), dtype=jnp.float32)

    out = discriminator_forward(x, params)
    out = jax.block_until_ready(out)

    ref = reference_forward(x, params)
    assert out.shape == (B, 1), out.shape
    assert jnp.allclose(out, ref, atol=1e-5, rtol=1e-5), \
        f"max abs err {jnp.max(jnp.abs(out - ref))}"

    print("KERNEL_OK")
</pallas_src>

<mosaic_0001>
module attributes {stable_mosaic.version = 11 : i64} {
  func.func @_mlp_kernel(%arg0: i32, %arg1: memref<128x128xf32, #tpu.memory_space<vmem>>, %arg2: memref<128x512xf32, #tpu.memory_space<vmem>>, %arg3: memref<1x512xf32, #tpu.memory_space<vmem>>, %arg4: memref<512x256xf32, #tpu.memory_space<vmem>>, %arg5: memref<1x256xf32, #tpu.memory_space<vmem>>, %arg6: memref<256x128xf32, #tpu.memory_space<vmem>>, %arg7: memref<1x128xf32, #tpu.memory_space<vmem>>, %arg8: memref<128x128xf32, #tpu.memory_space<vmem>>, %arg9: memref<1x128xf32, #tpu.memory_space<vmem>>, %arg10: memref<128x128xf32, #tpu.memory_space<vmem>>) attributes {dimension_semantics = [#tpu.dimension_semantics<parallel>], iteration_bounds = array<i64: 2>, scalar_prefetch = 0 : i64, scratch_operands = 0 : i64, tpu.core_type = #tpu.core_type<tc>, window_params = [{transform_indices = @transform_0, window_bounds = array<i64: 128, 128>}, {pipeline_mode = #tpu.pipeline_mode<synchronous>, transform_indices = @transform_1, window_bounds = array<i64: 128, 512>}, {pipeline_mode = #tpu.pipeline_mode<synchronous>, transform_indices = @transform_2, window_bounds = array<i64: 1, 512>}, {pipeline_mode = #tpu.pipeline_mode<synchronous>, transform_indices = @transform_3, window_bounds = array<i64: 512, 256>}, {pipeline_mode = #tpu.pipeline_mode<synchronous>, transform_indices = @transform_4, window_bounds = array<i64: 1, 256>}, {pipeline_mode = #tpu.pipeline_mode<synchronous>, transform_indices = @transform_5, window_bounds = array<i64: 256, 128>}, {pipeline_mode = #tpu.pipeline_mode<synchronous>, transform_indices = @transform_6, window_bounds = array<i64: 1, 128>}, {pipeline_mode = #tpu.pipeline_mode<synchronous>, transform_indices = @transform_7, window_bounds = array<i64: 128, 128>}, {pipeline_mode = #tpu.pipeline_mode<synchronous>, transform_indices = @transform_8, window_bounds = array<i64: 1, 128>}, {transform_indices = @transform_9, window_bounds = array<i64: 128, 128>}]} {
    %c0 = arith.constant 0 : index
    %c0_0 = arith.constant 0 : index
    %0 = vector.load %arg1[%c0, %c0_0] : memref<128x128xf32, #tpu.memory_space<vmem>>, vector<128x128xf32>
    %c0_1 = arith.constant 0 : index
    %c0_2 = arith.constant 0 : index
    %1 = vector.load %arg2[%c0_1, %c0_2] : memref<128x512xf32, #tpu.memory_space<vmem>>, vector<128x512xf32>
    %cst = arith.constant dense<0.000000e+00> : vector<128x512xf32>
    %2 = tpu.matmul %0, %1, %cst {dimension_numbers = #tpu.dot_dimension_numbers<[1], [0], [0], [1], [0, 0, 1, 1], [], []>} : vector<128x128xf32>, vector<128x512xf32>, vector<128x512xf32> -> vector<128x512xf32>
    %c0_3 = arith.constant 0 : index
    %c0_4 = arith.constant 0 : index
    %3 = vector.load %arg3[%c0_3, %c0_4] : memref<1x512xf32, #tpu.memory_space<vmem>>, vector<1x512xf32>
    %4 = vector.broadcast %3 : vector<1x512xf32> to vector<128x512xf32>
    %5 = arith.addf %2, %4 : vector<128x512xf32>
    %cst_5 = arith.constant 0.000000e+00 : f32
    %6 = vector.broadcast %cst_5 : f32 to vector<128x512xf32>
    %7 = arith.maximumf %5, %6 : vector<128x512xf32>
    %c0_6 = arith.constant 0 : index
    %c0_7 = arith.constant 0 : index
    %8 = vector.load %arg4[%c0_6, %c0_7] : memref<512x256xf32, #tpu.memory_space<vmem>>, vector<512x256xf32>
    %cst_8 = arith.constant dense<0.000000e+00> : vector<128x256xf32>
    %9 = tpu.matmul %7, %8, %cst_8 {dimension_numbers = #tpu.dot_dimension_numbers<[1], [0], [0], [1], [0, 0, 1, 1], [], []>} : vector<128x512xf32>, vector<512x256xf32>, vector<128x256xf32> -> vector<128x256xf32>
    %c0_9 = arith.constant 0 : index
    %c0_10 = arith.constant 0 : index
    %10 = vector.load %arg5[%c0_9, %c0_10] : memref<1x256xf32, #tpu.memory_space<vmem>>, vector<1x256xf32>
    %11 = vector.broadcast %10 : vector<1x256xf32> to vector<128x256xf32>
    %12 = arith.addf %9, %11 : vector<128x256xf32>
    %cst_11 = arith.constant 0.000000e+00 : f32
    %13 = vector.broadcast %cst_11 : f32 to vector<128x256xf32>
    %14 = arith.maximumf %12, %13 : vector<128x256xf32>
    %c0_12 = arith.constant 0 : index
    %c0_13 = arith.constant 0 : index
    %15 = vector.load %arg6[%c0_12, %c0_13] : memref<256x128xf32, #tpu.memory_space<vmem>>, vector<256x128xf32>
    %cst_14 = arith.constant dense<0.000000e+00> : vector<128x128xf32>
    %16 = tpu.matmul %14, %15, %cst_14 {dimension_numbers = #tpu.dot_dimension_numbers<[1], [0], [0], [1], [0, 0, 1, 1], [], []>} : vector<128x256xf32>, vector<256x128xf32>, vector<128x128xf32> -> vector<128x128xf32>
    %c0_15 = arith.constant 0 : index
    %c0_16 = arith.constant 0 : index
    %17 = vector.load %arg7[%c0_15, %c0_16] : memref<1x128xf32, #tpu.memory_space<vmem>>, vector<1x128xf32>
    %18 = vector.broadcast %17 : vector<1x128xf32> to vector<128x128xf32>
    %19 = arith.addf %16, %18 : vector<128x128xf32>
    %cst_17 = arith.constant 0.000000e+00 : f32
    %20 = vector.broadcast %cst_17 : f32 to vector<128x128xf32>
    %21 = arith.maximumf %19, %20 : vector<128x128xf32>
    %c0_18 = arith.constant 0 : index
    %c0_19 = arith.constant 0 : index
    %22 = vector.load %arg8[%c0_18, %c0_19] : memref<128x128xf32, #tpu.memory_space<vmem>>, vector<128x128xf32>
    %cst_20 = arith.constant dense<0.000000e+00> : vector<128x128xf32>
    %23 = tpu.matmul %21, %22, %cst_20 {dimension_numbers = #tpu.dot_dimension_numbers<[1], [0], [0], [1], [0, 0, 1, 1], [], []>} : vector<128x128xf32>, vector<128x128xf32>, vector<128x128xf32> -> vector<128x128xf32>
    %c0_21 = arith.constant 0 : index
    %c0_22 = arith.constant 0 : index
    %24 = vector.load %arg9[%c0_21, %c0_22] : memref<1x128xf32, #tpu.memory_space<vmem>>, vector<1x128xf32>
    %25 = vector.broadcast %24 : vector<1x128xf32> to vector<128x128xf32>
    %26 = arith.addf %23, %25 : vector<128x128xf32>
    %27 = arith.negf %26 : vector<128x128xf32>
    %28 = math.exp %27 : vector<128x128xf32>
    %cst_23 = arith.constant 1.000000e+00 : f32
    %29 = vector.broadcast %cst_23 : f32 to vector<128x128xf32>
    %30 = arith.addf %29, %28 : vector<128x128xf32>
    %31 = arith.divf %29, %30 : vector<128x128xf32>
    %c0_24 = arith.constant 0 : index
    %c0_25 = arith.constant 0 : index
    %32 = vector.load %arg10[%c0_24, %c0_25] : memref<128x128xf32, #tpu.memory_space<vmem>>, vector<128x128xf32>
    tpu.vector_store %arg10[%c0_24, %c0_25], %31 {strides = array<i32>} : memref<128x128xf32, #tpu.memory_space<vmem>>, vector<128x128xf32>,
    return
  }
  func.func @transform_0(%arg0: i32) -> (i32, i32) {
    %c0_i32 = arith.constant 0 : i32
    %c0_i32_0 = arith.constant 0 : i32
    return %arg0, %c0_i32 : i32, i32
  }
  func.func @transform_1(%arg0: i32) -> (i32, i32) {
    %c0_i32 = arith.constant 0 : i32
    %c0_i32_0 = arith.constant 0 : i32
    %c0_i32_1 = arith.constant 0 : i32
    return %c0_i32, %c0_i32_0 : i32, i32
  }
  func.func @transform_2(%arg0: i32) -> (i32, i32) {
    %c0_i32 = arith.constant 0 : i32
    %c0_i32_0 = arith.constant 0 : i32
    %c0_i32_1 = arith.constant 0 : i32
    return %c0_i32, %c0_i32_0 : i32, i32
  }
  func.func @transform_3(%arg0: i32) -> (i32, i32) {
    %c0_i32 = arith.constant 0 : i32
    %c0_i32_0 = arith.constant 0 : i32
    %c0_i32_1 = arith.constant 0 : i32
    return %c0_i32, %c0_i32_0 : i32, i32
  }
  func.func @transform_4(%arg0: i32) -> (i32, i32) {
    %c0_i32 = arith.constant 0 : i32
    %c0_i32_0 = arith.constant 0 : i32
    %c0_i32_1 = arith.constant 0 : i32
    return %c0_i32, %c0_i32_0 : i32, i32
  }
  func.func @transform_5(%arg0: i32) -> (i32, i32) {
    %c0_i32 = arith.constant 0 : i32
    %c0_i32_0 = arith.constant 0 : i32
    %c0_i32_1 = arith.constant 0 : i32
    return %c0_i32, %c0_i32_0 : i32, i32
  }
  func.func @transform_6(%arg0: i32) -> (i32, i32) {
    %c0_i32 = arith.constant 0 : i32
    %c0_i32_0 = arith.constant 0 : i32
    %c0_i32_1 = arith.constant 0 : i32
    return %c0_i32, %c0_i32_0 : i32, i32
  }
  func.func @transform_7(%arg0: i32) -> (i32, i32) {
    %c0_i32 = arith.constant 0 : i32
    %c0_i32_0 = arith.constant 0 : i32
    %c0_i32_1 = arith.constant 0 : i32
    return %c0_i32, %c0_i32_0 : i32, i32
  }
  func.func @transform_8(%arg0: i32) -> (i32, i32) {
    %c0_i32 = arith.constant 0 : i32
    %c0_i32_0 = arith.constant 0 : i32
    %c0_i32_1 = arith.constant 0 : i32
    return %c0_i32, %c0_i32_0 : i32, i32
  }
  func.func @transform_9(%arg0: i32) -> (i32, i32) {
    %c0_i32 = arith.constant 0 : i32
    %c0_i32_0 = arith.constant 0 : i32
    return %arg0, %c0_i32 : i32, i32
  }
}

</mosaic_0001>

<bundles_post_ra>
// kernel: tpu_custom_call.1
= control target key start
LH: loop header
LB: loop body
LE: loop exit
PB: predicated region body
PF: predicated region fallthrough
CT: control target
= control target key end

     0   :  { %s4046_s0 = inlined_call_operand.hbm [shape: f32[256,128], index: 0, kind: input, shape index: {}]   ;;  %s4047_s1 = inlined_call_operand.hbm [shape: f32[128,512], index: 1, kind: input, shape index: {}]   ;;  %s4048_s2 = inlined_call_operand.hbm [shape: f32[1,512], index: 2, kind: input, shape index: {}]   ;;  %s4049_s3 = inlined_call_operand.hbm [shape: f32[512,256], index: 3, kind: input, shape index: {}]   ;;  %s4050_s4 = inlined_call_operand.vmem [shape: f32[1,256], index: 4, kind: input, shape index: {}]   ;;  %s4051_s5 = inlined_call_operand.hbm [shape: f32[256,128], index: 5, kind: input, shape index: {}]   ;;  %s4052_s6 = inlined_call_operand.vmem [shape: f32[1,128], index: 6, kind: input, shape index: {}]   ;;  %s4053_s7 = inlined_call_operand.hbm [shape: f32[128,128], index: 7, kind: input, shape index: {}]   ;;  %s4054_s8 = inlined_call_operand.vmem [shape: f32[1,128], index: 8, kind: input, shape index: {}]   ;;  %s4055_s9 = inlined_call_operand.hbm [shape: f32[256,128], index: 9, kind: output, shape index: {}]  }
   0x1   :  { %4123 = sst [smem:[#allocation26_spill]] %s4047_s1 }
   0x2   :  { %4124 = sst [smem:[#allocation27_spill]] %s4048_s2 }
   0x3   :  { %4125 = sst [smem:[#allocation28_spill]] %s4049_s3 }
   0x4   :  { %14 = vsyncpa [#allocation3], 0 }
   0x5   :  { %16 = vsyncpa [#allocation3 + $0x1], 0 }
   0x6   :  { %17 = vsyncpa [#allocation6], 0 }
   0x7   :  { %18 = vsyncpa [#allocation9], 0 }
   0x8   :  { %19 = vsyncpa [#allocation12], 0 }
   0x9   :  { %20 = vsyncpa [#allocation4], 0 }
   0xa   :  { %22 = vsyncpa [#allocation4 + $0x1], 0  ;;  %s2844_s30 = smov 0   ;;  %s2846_s10 = smov 0  }
   0xb   :  { %s2848_s11 = smov 0   ;;  %s2850_s12 = smov 0  }
   0xc LB: > { %s4126_s1 = sld [smem:[#allocation26_spill]]  ;;  %s2868_s16 = sadd.s32 4294967295, %s2779_s12   ;;  %s2779_s12 = sphi %s2850_s12, %s4213_s12   ;;  %s2775_s11 = sphi %s2848_s11, %s4212_s11   ;;  %s2771_s10 = sphi %s2846_s10, %s4211_s10   ;;  %s2767_s30 = sphi %s2844_s30, %s4210_s30  }
   0xd   : > { %p2261_p0 = scmp.ge.s32.totalorder %s2779_s12, 1  ;;  %p49_p1 = scmp.eq.s32.totalorder %s2868_s16, 0 }
   0xe   : > { %p253_p2 = scmp.lt.s32.totalorder %s2779_s12, 3  ;;  %s2781_s18 = smov [#allocation5]  }
   0xf   : > { %s266_s19 = sshll.u32 %s2781_s18, 4  ;;  %s4128_s3 = sld [smem:[#allocation28_spill]]  ;;  %s267_s19 = int_to_ptr.vmem [resolvable:$true] %s266_s19 }
  0x10   : > { %p2873_p3 = pnand %p2261_p0, %p253_p2  ;;  %s2782_s24 = smov [#allocation8]  }
  0x11   : > { %s292_s25 = sshll.u32 %s2782_s24, 4  ;;  %s2783_s26 = smov 512   ;;  %s293_s25 = int_to_ptr.vmem [resolvable:$true] %s292_s25 }
  0x12   : > { %s264_s15 = sshll.u32 %s4126_s1, 4  ;;  %p2374_p4 = pneg %p2873_p3  ;;  %s265_s15 = int_to_ptr.hbm [resolvable:$true] %s264_s15 }
  0x13   : > { %s2784_s27 = smov 32   ;;  %s2785_s28 = smov 256  }
  0x14   : > { %p2885_p6 = pnand %p2374_p4, %p49_p1  ;;  %s2786_s29 = smov 16  }
  0x15   : > { %s290_s22 = sshll.u32 %s4128_s3, 4  ;;  %s4130_s2 = sld [smem:[#allocation27_spill]]  ;;  %s291_s22 = int_to_ptr.hbm [resolvable:$true] %s290_s22 }
  0x16   : > { %2377 = dma.hbm_to_vmem [thread:$0]  (!%p2885_p6), %s265_s15, 8192, %s267_s19, [#allocation6], %s2783_s26, %s2783_s26, %s2784_s27  }
  0x17   : > { %2383 = dma.hbm_to_vmem [thread:$0]  (!%p2885_p6), %s291_s22, 16384, %s293_s25, [#allocation9], %s2785_s28, %s2785_s28, %s2786_s29  }
  0x18   : > { %s2787_s20 = smov [#allocation7]   ;;  %s307_s15 = sshll.u32 %s4051_s5, 4  ;;  %s308_s15 = int_to_ptr.hbm [resolvable:$true] %s307_s15 }
  0x19   : > { %s281_s21 = sshll.u32 %s2787_s20, 4  ;;  %s2788_s19 = smov [#allocation10]   ;;  %s282_s21 = int_to_ptr.vmem [resolvable:$true] %s281_s21 }
  0x1a   : > { %s309_s22 = sshll.u32 %s2788_s19, 4  ;;  %s4056_s25 = smov 128   ;;  %s310_s22 = int_to_ptr.vmem [resolvable:$true] %s309_s22 }
  0x1b   : > { %s279_s18 = sshll.u32 %s4130_s2, 4  ;;  %s4057_s26 = smov 8   ;;  %s280_s18 = int_to_ptr.hbm [resolvable:$true] %s279_s18 }
  0x1c   : > { %2380 = dma.hbm_to_vmem [thread:$0]  (!%p2885_p6), %s280_s18, 64, %s282_s21, [#allocation6]  }
  0x1d   : > { %2386 = dma.hbm_to_vmem [thread:$0]  (!%p2885_p6), %s308_s15, 4096, %s310_s22, [#allocation9], %s4056_s25, %s4056_s25, %s4057_s26  }
  0x1e   : > { %s324_s28 = sshll.u32 %s4053_s7, 4  ;;  %s2791_s29 = smov [#allocation11]   ;;  %s325_s28 = int_to_ptr.hbm [resolvable:$true] %s324_s28 }
  0x1f   : > { %s326_s13 = sshll.u32 %s2791_s29, 4  ;;  %s2260_s14 = sadd.s32 4294967294, %s2779_s12   ;;  %s327_s13 = int_to_ptr.vmem [resolvable:$true] %s326_s13 }
  0x20   : > { %2389 = dma.hbm_to_vmem [thread:$0]  (!%p2885_p6), %s325_s28, 2048, %s327_s13, [#allocation12], %s4056_s25, %s4056_s25, %s4057_s26  }
  0x21   : > { %s2916_s18 = sadd.s32 1, %s2779_s12   ;;  %s35_s20 = sadd.s32 1, %s2775_s11 }
  0x22   : > { %s32_s21 = ssub.s32 %s2779_s12, %s2916_s18  ;;  %p42_p7 = scmp.ne.s32.totalorder %s2775_s11, %s2771_s10 }
  0x23   : > { %p33_p8 = scmp.eq.s32.totalorder %s32_s21, 0  ;;  %p43_p9 = scmp.eq.s32.totalorder %s2779_s12, 0 }
  0x24   : > { %p48_p10 = scmp.ne.s32.totalorder %s2771_s10, %s2767_s30  ;;  %p240_p11 = scmp.eq.s32.totalorder %s2868_s16, 1 }
  0x25   : > { %s2928_s24 = scalar_select %p33_p8, %s2775_s11, %s35_s20  }
  0x26   : > { %p2932_p12 = por %p49_p1, %p48_p10  ;;  %p2936_p13 = por %p240_p11, %p42_p7 }
  0x27   : > { %p246_p0 = scmp.eq.s32.totalorder %s2260_s14, 1  ;;  %p44_p2 = por %p43_p9, %p42_p7 }
  0x28   : > { %s343_s19 = sand.u32 1, %s2775_s11   ;;  %p2403_p6 = scmp.lt.s32.totalorder %s2779_s12, 2 }
  0x29   : > { %p2941_p4 = por %p246_p0, %p48_p10  ;;  %s2268_s1 = sshll.u32 %s343_s19, 7 }
  0x2a   : > { %s2300_s27 = sshll.u32 %s2779_s12, 7  ;;  %s347_s21 = scalar_lea.vmem [#allocation2], %s2268_s1 }
  0x2b   : > { %s352_s13 = scalar_lea.hbm %s4046_s0, %s2300_s27  ;;  %s355_s25 = sshll.u32 %s347_s21, 4  ;;  %s356_s25 = int_to_ptr.vmem [resolvable:$true] %s355_s25 }
  0x2c   : > { %s353_s20 = sshll.u32 %s352_s13, 4  ;;  %p2950_p8 = pnand %p2403_p6, %p44_p2  ;;  %s354_s20 = int_to_ptr.hbm [resolvable:$true] %s353_s20 }
  0x2d   : > { %s344_s26 = scalar_lea.sflag [#allocation3], %s343_s19  ;;  %s2671_s2 = sshra.s32 %s354_s20, 4  ;;  %s2672_s2 = int_to_ptr.hbm [resolvable:$true] %s2671_s2 }
  0x2e   : > { %s2673_s3 = scalar_lea.hbm %s2672_s2, 128  ;;  %p2675_p9 = pneg %p2950_p8 }
  0x2f   : > { %p2674_p7 = scmp.ne.s32.totalorder %s2672_s2, %s2673_s3  ;;  %s2678_s1 = scalar_lea.hbm %s4046_s0, 256 }
  0x30   : > { %p2679_p0 = scmp.lt.s32.totalorder %s2672_s2, %s4046_s0  ;;  %p2680_p2 = scmp.lt.s32.totalorder %s2678_s1, %s2673_s3 }
  0x31   : > { %p2676_p10 = pnand %p2675_p9, %p2674_p7 }
  0x32   : > { %p2681_p6 = por %p2680_p2, %p2679_p0 }
  0x33   : > { %p2677_p11 = pneg %p2676_p10 }
  0x35   : > { %p2682_p5 = pnand %p2681_p6, %p2677_p11 }
  0x37   : > { %2685 = shalt.err (!%p2682_p5)
}
  0x38   : > { %s4135_s19 = smov 8   ;;  %s4136_s21 = smov 128  }
  0x39   : > { %2393 = dma.hbm_to_vmem [thread:$0]  (!%p2950_p8), %s354_s20, 2048, %s356_s25, %s344_s26, %s4136_s21, %s4136_s21, %s4135_s19  }
  0x3a   : > { %367 = sbr.rel (%p2873_p3) target bundleno = 1017 (0x3f9), region = 56 }
  0x3f   : > { %s2970_s27 = sand.u32 1, %s2771_s10  }
  0x40   : > { %s2272_s2 = sshll.u32 %s2970_s27, 7  ;;  %s370_s3 = scalar_lea.sflag [#allocation3], %s2970_s27 }
  0x41   : > { %s2976_s28 = scalar_lea.vmem [#allocation2], %s2272_s2 }
  0x42   : > { %2746 = dma.done.wait (%p2932_p12), %s370_s3, 2048  }
  0x43   : > { %2748 = vsyncadd (%p2932_p12), %s370_s3, 4294965248 }
  0x44   : > { %2750 = dma.done.wait (%p49_p1), [#allocation6], 8256  }
  0x45   : > { %2752 = vsyncadd (%p49_p1), [#allocation6], 4294959040 }
  0x46   : > { %2754 = dma.done.wait (%p49_p1), [#allocation9], 20480  }
  0x47   : > { %2756 = vsyncadd (%p49_p1), [#allocation9], 4294946816 }
  0x48   : > { %2758 = dma.done.wait (%p49_p1), [#allocation12], 2048  }
  0x49   : > { %2760 = vsyncadd (%p49_p1), [#allocation12], 4294965248  ;;  %v512_v0 = vld [vmem:[#allocation5 + $0x1e0] sm:$0xff]  ;;  %v2994_v5 = vld [vmem:[#allocation5 + $0x1e8] sm:$0xff]  ;;  %s3982_s1 = scalar_lea.vmem [#allocation13], %s2272_s2  ;;  %s2301_s29 = sshll.u32 %s2868_s16, 7 }
  0x4a   : > { %v508_v1 = vld [vmem:[#allocation5 + $0x1c0] sm:$0xff]  ;;  %526 = vmatpush.msra.mxu0 %v512_v0  ;;  %2302 = vmatpush.msra.mxu3 %v512_v0  ;;  %v2997_v7 = vld [vmem:[#allocation5 + $0x1c8] sm:$0xff]  ;;  %v515_v30 = vld [vmem:[#allocation5 + $0x1f8] sm:$0xff]  ;;  %s2135_s21 = scalar_lea.hbm %s4055_s9, %s2301_s29  ;;  %s2136_s16 = sshll.u32 %s3982_s1, 4  ;;  %s2137_s16 = int_to_ptr.vmem [resolvable:$true] %s2136_s16 }
  0x4b   : > { %v504_v2 = vld [vmem:[#allocation5 + $0x1a0] sm:$0xff]  ;;  %2318 = vmatpush.msra.mxu1 %v2994_v5  ;;  %v3000_v9 = vld [vmem:[#allocation5 + $0x1a8] sm:$0xff]  ;;  %v511_v31 = vld [vmem:[#allocation5 + $0x1d8] sm:$0xff]  ;;  %s2138_s2 = sshll.u32 %s2135_s21, 4  ;;  %s2124_s3 = scalar_lea.sflag [#allocation4], %s2970_s27  ;;  %s2139_s2 = int_to_ptr.hbm [resolvable:$true] %s2138_s2 }
  0x4c   : > { %527 = vmatpush.msra.mxu0 %v508_v1  ;;  %2303 = vmatpush.msra.mxu3 %v508_v1  ;;  %v500_v3 = vld [vmem:[#allocation5 + $0x180] sm:$0xff]  ;;  %v3003_v11 = vld [vmem:[#allocation5 + $0x188] sm:$0xff]  ;;  %v3041_v33 = vld [vmem:[#allocation5 + $0x1f0] sm:$0xff]  ;;  %s2721_s23 = scalar_lea.hbm %s4055_s9, 256 }
  0x4d   : > { %v496_v4 = vld [vmem:[#allocation5 + $0x160] sm:$0xff]  ;;  %2319 = vmatpush.msra.mxu1 %v2997_v7  ;;  %v3006_v13 = vld [vmem:[#allocation5 + $0x168] sm:$0xff]  ;;  %v507_v34 = vld [vmem:[#allocation5 + $0x1b8] sm:$0xff]  ;;  %2334 = vmatpush.msra.mxu2 %v3041_v33 }
  0x4e   : > { %528 = vmatpush.msra.mxu0 %v504_v2  ;;  %2304 = vmatpush.msra.mxu3 %v504_v2  ;;  %v492_v6 = vld [vmem:[#allocation5 + $0x140] sm:$0xff]  ;;  %v3009_v15 = vld [vmem:[#allocation5 + $0x148] sm:$0xff]  ;;  %v3048_v36 = vld [vmem:[#allocation5 + $0x1d0] sm:$0xff] }
  0x4f   : > { %v488_v8 = vld [vmem:[#allocation5 + $0x120] sm:$0xff]  ;;  %2320 = vmatpush.msra.mxu1 %v3000_v9  ;;  %v3012_v17 = vld [vmem:[#allocation5 + $0x128] sm:$0xff]  ;;  %v503_v38 = vld [vmem:[#allocation5 + $0x198] sm:$0xff]  ;;  %2335 = vmatpush.msra.mxu2 %v3048_v36 }
  0x50   : > { %529 = vmatpush.msra.mxu0 %v500_v3  ;;  %2305 = vmatpush.msra.mxu3 %v500_v3  ;;  %v484_v10 = vld [vmem:[#allocation5 + $0x100] sm:$0xff]  ;;  %v3015_v19 = vld [vmem:[#allocation5 + $0x108] sm:$0xff]  ;;  %v3059_v41 = vld [vmem:[#allocation5 + $0x1b0] sm:$0xff] }
  0x51   : > { %v480_v12 = vld [vmem:[#allocation5 + $0xe0] sm:$0xff]  ;;  %2321 = vmatpush.msra.mxu1 %v3003_v11  ;;  %v3018_v21 = vld [vmem:[#allocation5 + $0xe8] sm:$0xff]  ;;  %v499_v42 = vld [vmem:[#allocation5 + $0x178] sm:$0xff]  ;;  %2336 = vmatpush.msra.mxu2 %v3059_v41 }
  0x52   : > { %530 = vmatpush.msra.mxu0 %v496_v4  ;;  %2306 = vmatpush.msra.mxu3 %v496_v4  ;;  %v476_v14 = vld [vmem:[#allocation5 + $0xc0] sm:$0xff]  ;;  %v3021_v23 = vld [vmem:[#allocation5 + $0xc8] sm:$0xff]  ;;  %v495_v43 = vld [vmem:[#allocation5 + $0x158] sm:$0xff] }
  0x53   : > { %2322 = vmatpush.msra.mxu1 %v3006_v13  ;;  %v472_v16 = vld [vmem:[#allocation5 + $0xa0] sm:$0xff]  ;;  %v3024_v25 = vld [vmem:[#allocation5 + $0xa8] sm:$0xff]  ;;  %v3066_v45 = vld [vmem:[#allocation5 + $0x190] sm:$0xff] }
  0x54   : > { %531 = vmatpush.msra.mxu0 %v492_v6  ;;  %2307 = vmatpush.msra.mxu3 %v492_v6  ;;  %v468_v18 = vld [vmem:[#allocation5 + $0x80] sm:$0xff]  ;;  %v3033_v29 = vld [vmem:[#allocation5 + $0x88] sm:$0xff]  ;;  %v491_v46 = vld [vmem:[#allocation5 + $0x138] sm:$0xff] }
  0x55   : > { %2323 = vmatpush.msra.mxu1 %v3009_v15  ;;  %v464_v20 = vld [vmem:[#allocation5 + $0x60] sm:$0xff]  ;;  %v3039_v32 = vld [vmem:[#allocation5 + $0x68] sm:$0xff]  ;;  %2337 = vmatpush.msra.mxu2 %v3066_v45  ;;  %v3070_v47 = vld [vmem:[#allocation5 + $0x170] sm:$0xff] }
  0x56   : > { %532 = vmatpush.msra.mxu0 %v488_v8  ;;  %2308 = vmatpush.msra.mxu3 %v488_v8  ;;  %v460_v22 = vld [vmem:[#allocation5 + $0x40] sm:$0xff]  ;;  %v3046_v35 = vld [vmem:[#allocation5 + $0x48] sm:$0xff]  ;;  %v487_v48 = vld [vmem:[#allocation5 + $0x118] sm:$0xff] }
  0x57   : > { %2324 = vmatpush.msra.mxu1 %v3012_v17  ;;  %v456_v24 = vld [vmem:[#allocation5 + $0x20] sm:$0xff]  ;;  %v3051_v37 = vld [vmem:[%s2976_s28 + $0x8] sm:$0xff]  ;;  %2338 = vmatpush.msra.mxu2 %v3070_v47  ;;  %v3076_v49 = vld [vmem:[%s2976_s28 + $0x10] sm:$0xff] }
  0x58   : > { %533 = vmatpush.msra.mxu0 %v484_v10  ;;  %2309 = vmatpush.msra.mxu3 %v484_v10  ;;  %v452_v26 = vld [vmem:[#allocation5] sm:$0xff]  ;;  %v3057_v39 = vld [vmem:[%s2976_s28 + $0x28] sm:$0xff]  ;;  %v3079_v50 = vld [vmem:[%s2976_s28 + $0x30] sm:$0xff] }
  0x59   : > { %2325 = vmatpush.msra.mxu1 %v3015_v19  ;;  %v3028_v27 = vld [vmem:[%s2976_s28] sm:$0xff]  ;;  %v457_v40 = vld [vmem:[#allocation5 + $0x28] sm:$0xff]  ;;  %v3081_v51 = vld [vmem:[#allocation5 + $0x150] sm:$0xff] }
  0x5a   : > { %534 = vmatpush.msra.mxu0 %v480_v12  ;;  %2310 = vmatpush.msra.mxu3 %v480_v12  ;;  %v3031_v28 = vld [vmem:[%s2976_s28 + $0x20] sm:$0xff]  ;;  %v453_v44 = vld [vmem:[#allocation5 + $0x8] sm:$0xff]  ;;  %v483_v52 = vld [vmem:[#allocation5 + $0xf8] sm:$0xff] }
  0x5b   : > { %2326 = vmatpush.msra.mxu1 %v3018_v21  ;;  %2339 = vmatpush.msra.mxu2 %v3081_v51  ;;  %v490_v53 = vld [vmem:[#allocation5 + $0x130] sm:$0xff]  ;;  %v3090_v55 = vld [vmem:[%s2976_s28 + $0x18] sm:$0xff]  ;;  %v3104_v63 = vld [vmem:[%s2976_s28 + $0x40] sm:$0xff] }
  0x5c   : > { %535 = vmatpush.msra.mxu0 %v476_v14  ;;  %2311 = vmatpush.msra.mxu3 %v476_v14  ;;  %v486_v54 = vld [vmem:[#allocation5 + $0x110] sm:$0xff]  ;;  %v3095_v56 = vld [vmem:[%s2976_s28 + $0x38] sm:$0xff]  ;;  %v3113_v4 = vld [vmem:[%s2976_s28 + $0x48] sm:$0xff] }
  0x5d   : > { %2327 = vmatpush.msra.mxu1 %v3021_v23  ;;  %2340 = vmatpush.msra.mxu2 %v490_v53  ;;  %v482_v57 = vld [vmem:[#allocation5 + $0xf0] sm:$0xff]  ;;  %v479_v58 = vld [vmem:[#allocation5 + $0xd8] sm:$0xff]  ;;  %v3137_v12 = vld [vmem:[%s2976_s28 + $0x60] sm:$0xff] }
  0x5e   : > { %536 = vmatpush.msra.mxu0 %v472_v16  ;;  %2312 = vmatpush.msra.mxu3 %v472_v16  ;;  %v478_v59 = vld [vmem:[#allocation5 + $0xd0] sm:$0xff]  ;;  %v475_v61 = vld [vmem:[#allocation5 + $0xb8] sm:$0xff]  ;;  %v878_v14 = vld [vmem:[#allocation8 + $0xe0] sm:$0xff] }
  0x5f   : > { %2328 = vmatpush.msra.mxu1 %v3024_v25  ;;  %2341 = vmatpush.msra.mxu2 %v486_v54  ;;  %v474_v60 = vld [vmem:[#allocation5 + $0xb0] sm:$0xff]  ;;  %v471_v1 = vld [vmem:[#allocation5 + $0x98] sm:$0xff]  ;;  %v3144_v16 = vld [vmem:[%s2976_s28 + $0x68] sm:$0xff] }
  0x60   : > { %537 = vmatpush.msra.mxu0 %v468_v18  ;;  %2313 = vmatpush.msra.mxu3 %v468_v18  ;;  %v470_v62 = vld [vmem:[#allocation5 + $0x90] sm:$0xff]  ;;  %v467_v6 = vld [vmem:[#allocation5 + $0x78] sm:$0xff]  ;;  %v874_v18 = vld [vmem:[#allocation8 + $0xc0] sm:$0xff] }
  0x61   : > { %2329 = vmatpush.msra.mxu1 %v3033_v29  ;;  %2342 = vmatpush.msra.mxu2 %v482_v57  ;;  %v466_v0 = vld [vmem:[#allocation5 + $0x70] sm:$0xff]  ;;  %v3130_v10 = vld [vmem:[%s2976_s28 + $0x58] sm:$0xff] }
  0x62   : > { %538 = vmatpush.msra.mxu0 %v464_v20  ;;  %2314 = vmatpush.msra.mxu3 %v464_v20  ;;  %v462_v2 = vld [vmem:[#allocation5 + $0x50] sm:$0xff]  ;;  %v870_v20 = vld [vmem:[#allocation8 + $0xa0] sm:$0xff] }
  0x63   : > { %2330 = vmatpush.msra.mxu1 %v3039_v32  ;;  %2343 = vmatpush.msra.mxu2 %v478_v59  ;;  %v458_v3 = vld [vmem:[#allocation5 + $0x30] sm:$0xff] }
  0x64   : > { %539 = vmatpush.msra.mxu0 %v460_v22  ;;  %2315 = vmatpush.msra.mxu3 %v460_v22  ;;  %v3123_v8 = vld [vmem:[%s2976_s28 + $0x50] sm:$0xff] }
  0x65   : > { %2331 = vmatpush.msra.mxu1 %v3046_v35  ;;  %2344 = vmatpush.msra.mxu2 %v474_v60  ;;  %v3151_v22 = vld [vmem:[%s2976_s28 + $0x70] sm:$0xff] }
  0x66   : > { %540 = vmatpush.msra.mxu0 %v456_v24  ;;  %2316 = vmatpush.msra.mxu3 %v456_v24  ;;  %v866_v24 = vld [vmem:[#allocation8 + $0x80] sm:$0xff] }
  0x67   : > { %2332 = vmatpush.msra.mxu1 %v457_v40  ;;  %2345 = vmatpush.msra.mxu2 %v470_v62 }
  0x68   : > { %541 = vmatpush.msra.mxu0 %v452_v26  ;;  %2317 = vmatpush.msra.mxu3 %v452_v26  ;;  %v862_v26 = vld [vmem:[#allocation8 + $0x60] sm:$0xff] }
  0x69   : > { %542 = vmatmul.f32.vlgmr.msra.gmra.mxu0 %v3028_v27  ;;  %554 = vmatmul.f32.vlgmr.msra.gmra.mxu3 %v3031_v28 }
  0x6a   : > { %721 = vmatpush.msrb.mxu3 %v515_v30  ;;  %591 = vmatpush.msrb.mxu0 %v2994_v5  ;;  %v454_v5 = vld [vmem:[#allocation5 + $0x10] sm:$0xff]  ;;  %v3158_v30 = vld [vmem:[%s2976_s28 + $0x78] sm:$0xff]  ;;  %s2715_s28 = sshra.s32 %s2139_s2, 4  ;;  %s2716_s28 = int_to_ptr.hbm [resolvable:$true] %s2715_s28 }
  0x6b   : > { %2333 = vmatpush.msra.mxu1 %v453_v44  ;;  %2346 = vmatpush.msra.mxu2 %v466_v0  ;;  %s2717_s17 = scalar_lea.hbm %s2716_s28, 128  ;;  %p2722_p12 = scmp.lt.s32.totalorder %s2716_s28, %s4055_s9 }
  0x6c   : > { %592 = vmatpush.msrb.mxu0 %v2997_v7  ;;  %722 = vmatpush.msrb.mxu3 %v511_v31  ;;  %v463_v7 = vld [vmem:[#allocation5 + $0x58] sm:$0xff]  ;;  %p2718_p1 = scmp.ne.s32.totalorder %s2716_s28, %s2717_s17  ;;  %p2723_p8 = scmp.lt.s32.totalorder %s2721_s23, %s2717_s17 }
  0x6d   : > { %619 = vmatmul.f32.vlgmr.msra.gmra.mxu1 %v3031_v28  ;;  %2347 = vmatpush.msra.mxu2 %v462_v2  ;;  %v972_v31 = vld [vmem:[#allocation8 + $0x3d0] sm:$0xff] }
  0x6e   : > { %593 = vmatpush.msrb.mxu0 %v3000_v9  ;;  %723 = vmatpush.msrb.mxu3 %v507_v34  ;;  %v459_v9 = vld [vmem:[#allocation5 + $0x38] sm:$0xff]  ;;  %v854_v34 = vld [vmem:[#allocation8 + $0x20] sm:$0xff]  ;;  %p2719_p3 = pnand %p2718_p1, %p2936_p13  ;;  %p2724_p7 = por %p2723_p8, %p2722_p12 }
  0x6f   : > { %2348 = vmatpush.msra.mxu2 %v458_v3 }
  0x70   : > { %594 = vmatpush.msrb.mxu0 %v3003_v11  ;;  %724 = vmatpush.msrb.mxu3 %v503_v38  ;;  %v455_v11 = vld [vmem:[#allocation5 + $0x18] sm:$0xff]  ;;  %v850_v38 = vld [vmem:[#allocation8] sm:$0xff]  ;;  %p2720_p5 = pneg %p2719_p3 }
  0x71   : > { %545 = vmatmul.f32.gmra.mxu0 %v3051_v37  ;;  %557 = vmatmul.f32.gmra.mxu3 %v3057_v39 }
  0x72   : > { %595 = vmatpush.msrb.mxu0 %v3006_v13  ;;  %725 = vmatpush.msrb.mxu3 %v499_v42  ;;  %v880_v13 = vld [vmem:[#allocation8 + $0xf0] sm:$0xff]  ;;  %p2725_p9 = pnand %p2724_p7, %p2720_p5 }
  0x73   : > { %2349 = vmatpush.msra.mxu2 %v454_v5  ;;  %v944_v42 = vld [vmem:[#allocation8 + $0x2f0] sm:$0xff] }
  0x74   : > { %596 = vmatpush.msrb.mxu0 %v3009_v15  ;;  %726 = vmatpush.msrb.mxu3 %v495_v43  ;;  %v876_v15 = vld [vmem:[#allocation8 + $0xd0] sm:$0xff] }
  0x75   : > { %622 = vmatmul.f32.gmra.mxu1 %v3057_v39  ;;  %684 = vmatmul.f32.vlgmr.msra.gmra.mxu2 %v3031_v28  ;;  %v908_v43 = vld [vmem:[#allocation8 + $0x1d0] sm:$0xff] }
  0x76   : > { %597 = vmatpush.msrb.mxu0 %v3012_v17  ;;  %727 = vmatpush.msrb.mxu3 %v491_v46  ;;  %v976_v17 = vld [vmem:[#allocation8 + $0x3f0] sm:$0xff]  ;;  %v942_v46 = vld [vmem:[#allocation8 + $0x2e0] sm:$0xff] }
  0x77   : > { %1114 = vmatpush.msrb.mxu2 %v944_v42 }
  0x78   : > { %598 = vmatpush.msrb.mxu0 %v3015_v19  ;;  %728 = vmatpush.msrb.mxu3 %v487_v48  ;;  %v872_v19 = vld [vmem:[#allocation8 + $0xb0] sm:$0xff] }
  0x79   : > { %548 = vmatmul.f32.gmra.mxu0 %v3076_v49  ;;  %560 = vmatmul.f32.gmra.mxu3 %v3079_v50  ;;  %v900_v48 = vld [vmem:[#allocation8 + $0x190] sm:$0xff] }
  0x7a   : > { %599 = vmatpush.msrb.mxu0 %v3018_v21  ;;  %729 = vmatpush.msrb.mxu3 %v483_v52  ;;  %v868_v21 = vld [vmem:[#allocation8 + $0x90] sm:$0xff]  ;;  %v898_v52 = vld [vmem:[#allocation8 + $0x180] sm:$0xff] }
  0x7b   : > { %1115 = vmatpush.msrb.mxu2 %v942_v46  ;;  %v914_v46 = vld [vmem:[#allocation8 + $0x200] sm:$0xff] }
  0x7c   : > { %600 = vmatpush.msrb.mxu0 %v3021_v23  ;;  %730 = vmatpush.msrb.mxu3 %v479_v58  ;;  %v974_v23 = vld [vmem:[#allocation8 + $0x3e0] sm:$0xff]  ;;  %v3171_v58 = vld [vmem:[#allocation7] sm:$0xf] }
  0x7d   : > { %625 = vmatmul.f32.gmra.mxu1 %v3079_v50  ;;  %687 = vmatmul.f32.gmra.mxu2 %v3057_v39 }
  0x7e   : > { %601 = vmatpush.msrb.mxu0 %v3024_v25  ;;  %731 = vmatpush.msrb.mxu3 %v475_v61  ;;  %v864_v25 = vld [vmem:[#allocation8 + $0x70] sm:$0xff]  ;;  %v3176_v61 = vperm.slane %v3171_v58, 0 }
  0x80   : > { %602 = vmatpush.msrb.mxu0 %v3033_v29  ;;  %732 = vmatpush.msrb.mxu3 %v471_v1  ;;  %v860_v29 = vld [vmem:[#allocation8 + $0x50] sm:$0xff] }
  0x81   : > { %551 = vmatmul.f32.gmra.mxu0 %v3090_v55  ;;  %563 = vmatmul.f32.gmra.mxu3 %v3095_v56 }
  0x82   : > { %603 = vmatpush.msrb.mxu0 %v3039_v32  ;;  %733 = vmatpush.msrb.mxu3 %v467_v6  ;;  %v858_v32 = vld [vmem:[#allocation8 + $0x40] sm:$0xff] }
  0x83   : > { %v962_v6 = vld [vmem:[#allocation8 + $0x380] sm:$0xff] }
  0x84   : > { %604 = vmatpush.msrb.mxu0 %v3046_v35  ;;  %734 = vmatpush.msrb.mxu3 %v463_v7  ;;  %v852_v35 = vld [vmem:[#allocation8 + $0x10] sm:$0xff]  ;;  %v882_v7 = vld [vmem:[#allocation8 + $0x100] sm:$0xff] }
  0x85   : > { %628 = vmatmul.f32.gmra.mxu1 %v3095_v56  ;;  %690 = vmatmul.f32.gmra.mxu2 %v3079_v50 }
  0x86   : > { %605 = vmatpush.msrb.mxu0 %v457_v40  ;;  %735 = vmatpush.msrb.mxu3 %v459_v9  ;;  %v912_v40 = vld [vmem:[#allocation8 + $0x1f0] sm:$0xff] }
  0x87   : > { %1049 = vmatpush.msrb.mxu1 %v912_v40 }
  0x88   : > { %606 = vmatpush.msrb.mxu0 %v453_v44  ;;  %736 = vmatpush.msrb.mxu3 %v455_v11  ;;  %v968_v44 = vld [vmem:[#allocation8 + $0x3b0] sm:$0xff]  ;;  %v934_v11 = vld [vmem:[#allocation8 + $0x2a0] sm:$0xff] }
  0x89   : > { %566 = vmatmul.f32.gmra.mxu3 %v3104_v63  ;;  %607 = vmatmul.f32.vlgmr.msrb.gmra.mxu0 %v3028_v27 }
  0x8a   : > { %656 = vmatpush.msra.mxu0 %v3041_v33  ;;  %1179 = vmatpush.msra.mxu3 %v976_v17  ;;  %v856_v33 = vld [vmem:[#allocation8 + $0x30] sm:$0xff] }
  0x8b   : > { %v932_v17 = vld [vmem:[#allocation8 + $0x290] sm:$0xff] }
  0x8c   : > { %657 = vmatpush.msra.mxu0 %v3048_v36  ;;  %1180 = vmatpush.msra.mxu3 %v974_v23  ;;  %v970_v36 = vld [vmem:[#allocation8 + $0x3c0] sm:$0xff] }
  0x8d   : > { %631 = vmatmul.f32.gmra.mxu1 %v3104_v63  ;;  %693 = vmatmul.f32.gmra.mxu2 %v3095_v56  ;;  %v930_v23 = vld [vmem:[#allocation8 + $0x280] sm:$0xff] }
  0x8e   : > { %658 = vmatpush.msra.mxu0 %v3059_v41  ;;  %1181 = vmatpush.msra.mxu3 %v972_v31  ;;  %v910_v41 = vld [vmem:[#allocation8 + $0x1e0] sm:$0xff] }
  0x8f   : > { %1050 = vmatpush.msrb.mxu1 %v910_v41  ;;  %v918_v41 = vld [vmem:[#allocation8 + $0x220] sm:$0xff] }
  0x90   : > { %659 = vmatpush.msra.mxu0 %v3066_v45  ;;  %1182 = vmatpush.msra.mxu3 %v970_v36  ;;  %v906_v45 = vld [vmem:[#allocation8 + $0x1c0] sm:$0xff]  ;;  %v920_v36 = vld [vmem:[#allocation8 + $0x230] sm:$0xff] }
  0x91   : > { %569 = vmatmul.f32.gmra.mxu3 %v3113_v4  ;;  %610 = vmatmul.f32.gmra.mxu0 %v3051_v37 }
  0x92   : > { %660 = vmatpush.msra.mxu0 %v3070_v47  ;;  %1051 = vmatpush.msrb.mxu1 %v908_v43  ;;  %v902_v47 = vld [vmem:[#allocation8 + $0x1a0] sm:$0xff]  ;;  %v916_v43 = vld [vmem:[#allocation8 + $0x210] sm:$0xff] }
  0x93   : > { %1183 = vmatpush.msra.mxu3 %v968_v44 }
  0x94   : > { %661 = vmatpush.msra.mxu0 %v3081_v51  ;;  %1052 = vmatpush.msrb.mxu1 %v906_v45  ;;  %v966_v51 = vld [vmem:[#allocation8 + $0x3a0] sm:$0xff] }
  0x95   : > { %634 = vmatmul.f32.gmra.mxu1 %v3113_v4  ;;  %696 = vmatmul.f32.gmra.mxu2 %v3104_v63 }
  0x96   : > { %662 = vmatpush.msra.mxu0 %v490_v53  ;;  %1184 = vmatpush.msra.mxu3 %v966_v51  ;;  %v896_v53 = vld [vmem:[#allocation8 + $0x170] sm:$0xff] }
  0x98   : > { %663 = vmatpush.msra.mxu0 %v486_v54  ;;  %v894_v54 = vld [vmem:[#allocation8 + $0x160] sm:$0xff] }
  0x99   : > { %572 = vmatmul.f32.gmra.mxu3 %v3123_v8  ;;  %613 = vmatmul.f32.gmra.mxu0 %v3076_v49 }
  0x9a   : > { %664 = vmatpush.msra.mxu0 %v482_v57  ;;  %v892_v57 = vld [vmem:[#allocation8 + $0x150] sm:$0xff] }
  0x9c   : > { %665 = vmatpush.msra.mxu0 %v478_v59  ;;  %v938_v59 = vld [vmem:[#allocation8 + $0x2c0] sm:$0xff] }
  0x9d   : > { %637 = vmatmul.f32.gmra.mxu1 %v3123_v8  ;;  %699 = vmatmul.f32.gmra.mxu2 %v3113_v4 }
  0x9e   : > { %666 = vmatpush.msra.mxu0 %v474_v60  ;;  %v890_v60 = vld [vmem:[#allocation8 + $0x140] sm:$0xff] }
  0xa0   : > { %667 = vmatpush.msra.mxu0 %v470_v62  ;;  %v888_v62 = vld [vmem:[#allocation8 + $0x130] sm:$0xff] }
  0xa1   : > { %575 = vmatmul.f32.gmra.mxu3 %v3130_v10  ;;  %616 = vmatmul.f32.gmra.mxu0 %v3090_v55 }
  0xa2   : > { %668 = vmatpush.msra.mxu0 %v466_v0  ;;  %v886_v0 = vld [vmem:[#allocation8 + $0x120] sm:$0xff] }
  0xa4   : > { %669 = vmatpush.msra.mxu0 %v462_v2 }
  0xa5   : > { %640 = vmatmul.f32.gmra.mxu1 %v3130_v10  ;;  %702 = vmatmul.f32.gmra.mxu2 %v3123_v8 }
  0xa6   : > { %670 = vmatpush.msra.mxu0 %v458_v3 }
  0xa8   : > { %671 = vmatpush.msra.mxu0 %v454_v5  ;;  %v936_v5 = vld [vmem:[#allocation8 + $0x2b0] sm:$0xff] }
  0xa9   : > { %578 = vmatmul.f32.gmra.mxu3 %v3137_v12  ;;  %672 = vmatmul.f32.vlgmr.msra.gmra.mxu0 %v3028_v27 }
  0xaa   : > { %984 = vmatpush.msrb.mxu0 %v880_v13 }
  0xac   : > { %985 = vmatpush.msrb.mxu0 %v878_v14 }
  0xad   : > { %643 = vmatmul.f32.gmra.mxu1 %v3137_v12  ;;  %705 = vmatmul.f32.gmra.mxu2 %v3130_v10 }
  0xae   : > { %986 = vmatpush.msrb.mxu0 %v876_v15  ;;  %v960_v15 = vld [vmem:[#allocation8 + $0x370] sm:$0xff] }
  0xb0   : > { %987 = vmatpush.msrb.mxu0 %v874_v18 }
  0xb1   : > { %581 = vmatmul.f32.gmra.mxu3 %v3144_v16  ;;  %675 = vmatmul.f32.gmra.mxu0 %v3051_v37 }
  0xb2   : > { %988 = vmatpush.msrb.mxu0 %v872_v19 }
  0xb4   : > { %989 = vmatpush.msrb.mxu0 %v870_v20 }
  0xb5   : > { %646 = vmatmul.f32.gmra.mxu1 %v3144_v16  ;;  %708 = vmatmul.f32.gmra.mxu2 %v3137_v12 }
  0xb6   : > { %990 = vmatpush.msrb.mxu0 %v868_v21 }
  0xb8   : > { %991 = vmatpush.msrb.mxu0 %v866_v24  ;;  %v928_v24 = vld [vmem:[#allocation8 + $0x270] sm:$0xff] }
  0xb9   : > { %584 = vmatmul.f32.gmra.mxu3 %v3151_v22  ;;  %678 = vmatmul.f32.gmra.mxu0 %v3076_v49 }
  0xba   : > { %992 = vmatpush.msrb.mxu0 %v864_v25 }
  0xbc   : > { %993 = vmatpush.msrb.mxu0 %v862_v26  ;;  %v926_v26 = vld [vmem:[#allocation8 + $0x260] sm:$0xff] }
  0xbd   : > { %649 = vmatmul.f32.gmra.mxu1 %v3151_v22  ;;  %711 = vmatmul.f32.gmra.mxu2 %v3144_v16 }
  0xbe   : > { %994 = vmatpush.msrb.mxu0 %v860_v29 }
  0xc0   : > { %995 = vmatpush.msrb.mxu0 %v858_v32  ;;  %v924_v32 = vld [vmem:[#allocation8 + $0x250] sm:$0xff] }
  0xc1   : > { %587 = vmatmul.f32.gmra.mxu3 %v3158_v30  ;;  %681 = vmatmul.f32.gmra.mxu0 %v3090_v55 }
  0xc2   : > { %996 = vmatpush.msrb.mxu0 %v856_v33  ;;  %v956_v33 = vld [vmem:[#allocation8 + $0x350] sm:$0xff] }
  0xc4   : > { %997 = vmatpush.msrb.mxu0 %v854_v34  ;;  %v922_v34 = vld [vmem:[#allocation8 + $0x240] sm:$0xff] }
  0xc5   : > { %652 = vmatmul.f32.gmra.mxu1 %v3158_v30  ;;  %714 = vmatmul.f32.gmra.mxu2 %v3151_v22 }
  0xc6   : > { %998 = vmatpush.msrb.mxu0 %v852_v35  ;;  %v3208_v35 = vperm.slane %v3171_v58, 1 }
  0xc8   : > { %999 = vmatpush.msrb.mxu0 %v850_v38 }
  0xc9   : > { %737 = vmatmul.f32.vlgmr.msrb.gmra.mxu3 %v3028_v27  ;;  %v904_v27 = vld [vmem:[#allocation8 + $0x1b0] sm:$0xff] }
  0xca   : > { %1053 = vmatpush.msrb.mxu1 %v904_v27  ;;  %v954_v27 = vld [vmem:[#allocation8 + $0x340] sm:$0xff] }
  0xcc   : > { %1054 = vmatpush.msrb.mxu1 %v902_v47 }
  0xcd   : > { %717 = vmatmul.f32.gmra.mxu2 %v3158_v30 }
  0xce   : > { %1055 = vmatpush.msrb.mxu1 %v900_v48 }
  0xd0   : > { %1056 = vmatpush.msrb.mxu1 %v898_v52 }
  0xd1   : > { %740 = vmatmul.f32.gmra.mxu3 %v3051_v37  ;;  %v940_v37 = vld [vmem:[#allocation8 + $0x2d0] sm:$0xff] }
  0xd2   : > { %1116 = vmatpush.msrb.mxu2 %v940_v37  ;;  %1057 = vmatpush.msrb.mxu1 %v896_v53 }
  0xd4   : > { %1058 = vmatpush.msrb.mxu1 %v894_v54  ;;  %1117 = vmatpush.msrb.mxu2 %v938_v59  ;;  %v952_v54 = vld [vmem:[#allocation8 + $0x330] sm:$0xff] }
  0xd6   : > { %1059 = vmatpush.msrb.mxu1 %v892_v57  ;;  %1118 = vmatpush.msrb.mxu2 %v936_v5 }
  0xd8   : > { %1060 = vmatpush.msrb.mxu1 %v890_v60  ;;  %1119 = vmatpush.msrb.mxu2 %v934_v11 }
  0xd9   : > { %743 = vmatmul.f32.gmra.mxu3 %v3076_v49  ;;  %v964_v49 = vld [vmem:[#allocation8 + $0x390] sm:$0xff] }
  0xda   : > { %1185 = vmatpush.msra.mxu3 %v964_v49  ;;  %1061 = vmatpush.msrb.mxu1 %v888_v62 }
  0xdb   : > { %1120 = vmatpush.msrb.mxu2 %v932_v17  ;;  %v3266_v17 = vperm.slane %v3171_v58, 2 }
  0xdc   : > { %1062 = vmatpush.msrb.mxu1 %v886_v0  ;;  %1186 = vmatpush.msra.mxu3 %v962_v6 }
  0xdd   : > { %1121 = vmatpush.msrb.mxu2 %v930_v23 }
  0xde   : > { %1187 = vmatpush.msra.mxu3 %v960_v15 }
  0xdf   : > { %1122 = vmatpush.msrb.mxu2 %v928_v24  ;;  %v946_v24 = vld [vmem:[#allocation8 + $0x300] sm:$0xff] }
  0xe1   : > { %746 = vmatmul.f32.gmra.mxu3 %v3090_v55  ;;  %v884_v55 = vld [vmem:[#allocation8 + $0x110] sm:$0xff]  ;;  %1123 = vmatpush.msrb.mxu2 %v926_v26 }
  0xe2   : > { %1063 = vmatpush.msrb.mxu1 %v884_v55 }
  0xe3   : > { %1124 = vmatpush.msrb.mxu2 %v924_v32 }
  0xe4   : > { %1064 = vmatpush.msrb.mxu1 %v882_v7 }
  0xe5   : > { %1125 = vmatpush.msrb.mxu2 %v922_v34 }
  0xe6   : > { %v543_v1 = vpop.f32.mrf.mxu0 }
  0xe7   : > { %v3179_v2 = vadd.f32 %v543_v1, %v3176_v61  ;;  %1126 = vmatpush.msrb.mxu2 %v920_v36  ;;  %v950_v1 = vld [vmem:[#allocation8 + $0x320] sm:$0xff]  ;;  %v881_v36 = vld [vmem:[#allocation8 + $0xf8] sm:$0xff] }
  0xe8   : > { %1244 = vmatpush.msra.mxu0 %v881_v36 }
  0xe9   : > { %v786_v3 = vmax.f32 %v3179_v2, 0.0  ;;  %749 = vmatmul.f32.gmra.mxu3 %v3031_v28  ;;  %1127 = vmatpush.msrb.mxu2 %v918_v41  ;;  %v879_v41 = vld [vmem:[#allocation8 + $0xe8] sm:$0xff] }
  0xea   : > { %v620_v47 = vpop.f32.mrf.mxu1  ;;  %1245 = vmatpush.msra.mxu0 %v879_v41  ;;  %v869_v41 = vld [vmem:[#allocation8 + $0x98] sm:$0xff] }
  0xeb   : > { %1000 = vmatmul.f32.vlgmr.msrb.gmra.mxu0 %v786_v3  ;;  %1128 = vmatpush.msrb.mxu2 %v916_v43  ;;  %v3263_v15 = vadd.f32 %v620_v47, %v3208_v35 }
  0xec   : > { %v555_v9 = vpop.f32.mrf.mxu3 }
  0xed   : > { %v3211_v40 = vadd.f32 %v555_v9, %v3176_v61  ;;  %1129 = vmatpush.msrb.mxu2 %v914_v46  ;;  %v877_v46 = vld [vmem:[#allocation8 + $0xd8] sm:$0xff] }
  0xee   : > { %v546_v13 = vpop.f32.mrf.mxu0  ;;  %1246 = vmatpush.msra.mxu0 %v877_v46  ;;  %v975_v46 = vld [vmem:[#allocation8 + $0x3e8] sm:$0xff] }
  0xef   : > { %v3187_v14 = vadd.f32 %v546_v13, %v3176_v61  ;;  %v802_v45 = vmax.f32 %v3211_v40, 0.0  ;;  %v948_v13 = vld [vmem:[#allocation8 + $0x310] sm:$0xff] }
  0xf1   : > { %752 = vmatmul.f32.gmra.mxu3 %v3057_v39  ;;  %v790_v28 = vmax.f32 %v3187_v14, 0.0  ;;  %v958_v39 = vld [vmem:[#allocation8 + $0x360] sm:$0xff] }
  0xf2   : > { %1188 = vmatpush.msra.mxu3 %v958_v39  ;;  %v623_v59 = vpop.f32.mrf.mxu1  ;;  %v4074_v39 = vmax.f32 %v3263_v15, 0.0 }
  0xf3   : > { %1003 = vmatmul.f32.gmra.mxu0 %v790_v28  ;;  %v3285_v32 = vadd.f32 %v623_v59, %v3208_v35 }
  0xf4   : > { %v558_v18 = vpop.f32.mrf.mxu3  ;;  %1189 = vmatpush.msra.mxu3 %v956_v33 }
  0xf5   : > { %v3224_v51 = vadd.f32 %v558_v18, %v3176_v61  ;;  %v4065_v43 = vmax.f32 %v3285_v32, 0.0 }
  0xf6   : > { %v549_v19 = vpop.f32.mrf.mxu0  ;;  %1190 = vmatpush.msra.mxu3 %v954_v27  ;;  %v945_v27 = vld [vmem:[#allocation8 + $0x2f8] sm:$0xff] }
  0xf7   : > { %v3194_v20 = vadd.f32 %v549_v19, %v3176_v61  ;;  %v4090_v37 = vmax.f32 %v3224_v51, 0.0  ;;  %1374 = vmatpush.msra.mxu2 %v945_v27 }
  0xf8   : > { %1191 = vmatpush.msra.mxu3 %v952_v54  ;;  %v3287_v33 = vpop.f32.mrf.mxu2  ;;  %v875_v54 = vld [vmem:[#allocation8 + $0xc8] sm:$0xff] }
  0xf9   : > { %755 = vmatmul.f32.gmra.mxu3 %v3079_v50  ;;  %v794_v21 = vmax.f32 %v3194_v20, 0.0  ;;  %1247 = vmatpush.msra.mxu0 %v875_v54 }
  0xfa   : > { %1192 = vmatpush.msra.mxu3 %v950_v1  ;;  %v626_v7 = vpop.f32.mrf.mxu1  ;;  %v873_v1 = vld [vmem:[#allocation8 + $0xb8] sm:$0xff] }
  0xfb   : > { %1006 = vmatmul.f32.gmra.mxu0 %v794_v21  ;;  %v3308_v59 = vadd.f32 %v626_v7, %v3208_v35 }
  0xfc   : > { %v561_v25 = vpop.f32.mrf.mxu3  ;;  %1193 = vmatpush.msra.mxu3 %v948_v13  ;;  %1248 = vmatpush.msra.mxu0 %v873_v1  ;;  %v911_v1 = vld [vmem:[#allocation8 + $0x1e8] sm:$0xff] }
  0xfd   : > { %v3237_v49 = vadd.f32 %v561_v25, %v3176_v61  ;;  %v4059_v36 = vmax.f32 %v3308_v59, 0.0 }
  0xfe   : > { %v552_v29 = vpop.f32.mrf.mxu0  ;;  %1194 = vmatpush.msra.mxu3 %v946_v24  ;;  %v871_v24 = vld [vmem:[#allocation8 + $0xa8] sm:$0xff] }
  0xff   : > { %v3201_v31 = vadd.f32 %v552_v29, %v3176_v61  ;;  %v4084_v62 = vmax.f32 %v3237_v49, 0.0  ;;  %1249 = vmatpush.msra.mxu0 %v871_v24 }
 0x100   : > { %v3317_v13 = vpop.f32.mrf.mxu2 }
 0x101   : > { %758 = vmatmul.f32.gmra.mxu3 %v3095_v56  ;;  %v798_v50 = vmax.f32 %v3201_v31, 0.0  ;;  %1250 = vmatpush.msra.mxu0 %v869_v41  ;;  %v863_v41 = vld [vmem:[#allocation8 + $0x68] sm:$0xff] }
 0x102   : > { %v629_v25 = vpop.f32.mrf.mxu1 }
 0x103   : > { %1009 = vmatmul.f32.gmra.mxu0 %v798_v50  ;;  %v3331_v54 = vadd.f32 %v629_v25, %v3208_v35 }
 0x104   : > { %v564_v38 = vpop.f32.mrf.mxu3 }
 0x105   : > { %v3250_v5 = vadd.f32 %v564_v38, %v3176_v61 }
 0x106   : > { %v608_v56 = vpop.f32.mrf.mxu0 }
 0x107   : > { %v3214_v42 = vadd.f32 %v608_v56, %v3208_v35  ;;  %v4081_v9 = vmax.f32 %v3250_v5, 0.0 }
 0x109   : > { %v4101_v44 = vmax.f32 %v3214_v42, 0.0  ;;  %761 = vmatmul.f32.gmra.mxu3 %v3104_v63 }
 0x10b   : > { %1012 = vmatmul.f32.gmra.mxu0 %v802_v45  ;;  %1065 = vmatmul.f32.vlgmr.msrb.gmra.mxu1 %v4101_v44 }
 0x10c   : > { %v567_v48 = vpop.f32.mrf.mxu3 }
 0x10e   : > { %v611_v52 = vpop.f32.mrf.mxu0 }
 0x10f   : > { %v3227_v63 = vadd.f32 %v611_v52, %v3208_v35  ;;  %v977_v52 = vld [vmem:[#allocation8 + $0x3f8] sm:$0xff] }
 0x110   : > { %1439 = vmatpush.msrb.mxu3 %v977_v52  ;;  %v867_v52 = vld [vmem:[#allocation8 + $0x88] sm:$0xff] }
 0x111   : > { %764 = vmatmul.f32.gmra.mxu3 %v3113_v4  ;;  %v4088_v53 = vmax.f32 %v3227_v63, 0.0  ;;  %1251 = vmatpush.msra.mxu0 %v867_v52 }
 0x112   : > { %1440 = vmatpush.msrb.mxu3 %v975_v46  ;;  %v4061_v46 = vmax.f32 %v3331_v54, 0.0 }
 0x113   : > { %1015 = vmatmul.f32.gmra.mxu0 %v4090_v37  ;;  %1068 = vmatmul.f32.gmra.mxu1 %v4088_v53  ;;  %v931_v53 = vld [vmem:[#allocation8 + $0x288] sm:$0xff] }
 0x114   : > { %v570_v57 = vpop.f32.mrf.mxu3  ;;  %v883_v37 = vld [vmem:[#allocation8 + $0x108] sm:$0xff] }
 0x116   : > { %v614_v60 = vpop.f32.mrf.mxu0 }
 0x117   : > { %v3240_v4 = vadd.f32 %v614_v60, %v3208_v35  ;;  %v913_v60 = vld [vmem:[#allocation8 + $0x1f8] sm:$0xff] }
 0x118   : > { %1309 = vmatpush.msra.mxu1 %v913_v60 }
 0x119   : > { %767 = vmatmul.f32.gmra.mxu3 %v3123_v8  ;;  %v4083_v0 = vmax.f32 %v3240_v4, 0.0 }
 0x11a   : > { %1310 = vmatpush.msra.mxu1 %v911_v1  ;;  %v973_v1 = vld [vmem:[#allocation8 + $0x3d8] sm:$0xff] }
 0x11b   : > { %1018 = vmatmul.f32.gmra.mxu0 %v4084_v62  ;;  %1071 = vmatmul.f32.gmra.mxu1 %v4083_v0  ;;  %v933_v0 = vld [vmem:[#allocation8 + $0x298] sm:$0xff] }
 0x11c   : > { %v573_v55 = vpop.f32.mrf.mxu3  ;;  %1441 = vmatpush.msrb.mxu3 %v973_v1 }
 0x11e   : > { %v617_v6 = vpop.f32.mrf.mxu0 }
 0x11f   : > { %v3253_v8 = vadd.f32 %v617_v6, %v3208_v35  ;;  %v3315_v6 = vadd.f32 %v573_v55, %v3176_v61 }
 0x121   : > { %770 = vmatmul.f32.gmra.mxu3 %v3130_v10  ;;  %v4077_v11 = vmax.f32 %v3253_v8, 0.0  ;;  %v3271_v10 = vadd.f32 %v567_v48, %v3176_v61  ;;  %v4060_v55 = vmax.f32 %v3315_v6, 0.0 }
 0x123   : > { %1021 = vmatmul.f32.gmra.mxu0 %v4081_v9  ;;  %1074 = vmatmul.f32.gmra.mxu1 %v4077_v11  ;;  %v4076_v29 = vmax.f32 %v3271_v10, 0.0 }
 0x124   : > { %v3268_v18 = vpop.f32.mrf.mxu3 }
 0x125   : > { %v3339_v24 = vadd.f32 %v3268_v18, %v3176_v61 }
 0x126   : > { %v673_v19 = vpop.f32.mrf.mxu0 }
 0x127   : > { %v3274_v23 = vadd.f32 %v673_v19, %v3266_v17  ;;  %v4062_v18 = vmax.f32 %v3339_v24, 0.0 }
 0x129   : > { %v4067_v26 = vmax.f32 %v3274_v23, 0.0  ;;  %773 = vmatmul.f32.gmra.mxu3 %v3137_v12  ;;  %v3294_v12 = vadd.f32 %v570_v57, %v3176_v61  ;;  %v632_v57 = vpop.f32.mrf.mxu1 }
 0x12b   : > { %1024 = vmatmul.f32.gmra.mxu0 %v4076_v29  ;;  %1077 = vmatmul.f32.gmra.mxu1 %v4074_v39  ;;  %v4066_v47 = vmax.f32 %v3294_v12, 0.0 }
 0x12c   : > { %1130 = vmatmul.f32.vlgmr.msrb.gmra.mxu2 %v4067_v26  ;;  %v3291_v34 = vpop.f32.mrf.mxu3  ;;  %v851_v26 = vld [vmem:[#allocation8 + $0x8] sm:$0xff] }
 0x12d   : > { %v3367_v1 = vadd.f32 %v3291_v34, %v3176_v61  ;;  %v971_v34 = vld [vmem:[#allocation8 + $0x3c8] sm:$0xff] }
 0x12e   : > { %v676_v38 = vpop.f32.mrf.mxu0  ;;  %1442 = vmatpush.msrb.mxu3 %v971_v34 }
 0x12f   : > { %v3297_v56 = vadd.f32 %v676_v38, %v3266_v17  ;;  %v943_v38 = vld [vmem:[#allocation8 + $0x2e8] sm:$0xff] }
 0x130   : > { %1375 = vmatpush.msra.mxu2 %v943_v38 }
 0x131   : > { %776 = vmatmul.f32.gmra.mxu3 %v3144_v16  ;;  %v4064_v48 = vmax.f32 %v3297_v56, 0.0  ;;  %v635_v60 = vpop.f32.mrf.mxu1 }
 0x133   : > { %1027 = vmatmul.f32.gmra.mxu0 %v4066_v47  ;;  %1080 = vmatmul.f32.gmra.mxu1 %v4065_v43  ;;  %v3373_v43 = vperm.slane %v3171_v58, 3  ;;  %v3386_v58 = vadd.f32 %v3317_v13, %v3266_v17 }
 0x134   : > { %1133 = vmatmul.f32.gmra.mxu2 %v4064_v48  ;;  %v3312_v16 = vpop.f32.mrf.mxu3 }
 0x136   : > { %v679_v19 = vpop.f32.mrf.mxu0 }
 0x137   : > { %v3320_v7 = vadd.f32 %v679_v19, %v3266_v17  ;;  %v865_v19 = vld [vmem:[#allocation8 + $0x78] sm:$0xff] }
 0x138   : > { %1252 = vmatpush.msra.mxu0 %v865_v19  ;;  %v859_v19 = vld [vmem:[#allocation8 + $0x48] sm:$0xff] }
 0x139   : > { %779 = vmatmul.f32.gmra.mxu3 %v3151_v22  ;;  %v4058_v27 = vmax.f32 %v3320_v7, 0.0 }
 0x13a   : > { %1253 = vmatpush.msra.mxu0 %v863_v41  ;;  %v857_v41 = vld [vmem:[#allocation8 + $0x38] sm:$0xff] }
 0x13b   : > { %1030 = vmatmul.f32.gmra.mxu0 %v4060_v55  ;;  %1083 = vmatmul.f32.gmra.mxu1 %v4059_v36  ;;  %v941_v36 = vld [vmem:[#allocation8 + $0x2d8] sm:$0xff] }
 0x13c   : > { %1136 = vmatmul.f32.gmra.mxu2 %v4058_v27  ;;  %v3335_v22 = vpop.f32.mrf.mxu3  ;;  %v3345_v27 = vpop.f32.mrf.mxu2  ;;  %v861_v55 = vld [vmem:[#allocation8 + $0x58] sm:$0xff] }
 0x13d   : > { %1376 = vmatpush.msra.mxu2 %v941_v36  ;;  %1254 = vmatpush.msra.mxu0 %v861_v55  ;;  %v3363_v36 = vadd.f32 %v3287_v33, %v3266_v17  ;;  %v909_v55 = vld [vmem:[#allocation8 + $0x1d8] sm:$0xff] }
 0x13e   : > { %v682_v38 = vpop.f32.mrf.mxu0  ;;  %1311 = vmatpush.msra.mxu1 %v909_v55  ;;  %v853_v33 = vld [vmem:[#allocation8 + $0x18] sm:$0xff]  ;;  %v3380_v55 = vadd.f32 %v635_v60, %v3208_v35 }
 0x13f   : > { %v3342_v25 = vadd.f32 %v682_v38, %v3266_v17  ;;  %v3355_v38 = vadd.f32 %v632_v57, %v3208_v35  ;;  %1255 = vmatpush.msra.mxu0 %v859_v19  ;;  %v855_v57 = vld [vmem:[#allocation8 + $0x28] sm:$0xff]  ;;  %v4068_v48 = vmax.f32 %v3363_v36, 0.0  ;;  %v4070_v19 = vmax.f32 %v3367_v1, 0.0 }
 0x140   : > { %v4073_v34 = vmax.f32 %v3380_v55, 0.0 }
 0x141   : > { %782 = vmatmul.f32.gmra.mxu3 %v3158_v30  ;;  %v4063_v52 = vmax.f32 %v3342_v25, 0.0  ;;  %1256 = vmatpush.msra.mxu0 %v857_v41  ;;  %v907_v41 = vld [vmem:[#allocation8 + $0x1c8] sm:$0xff] }
 0x142   : > { %1312 = vmatpush.msra.mxu1 %v907_v41  ;;  %v3412_v41 = vadd.f32 %v3345_v27, %v3266_v17  ;;  %v901_v27 = vld [vmem:[#allocation8 + $0x198] sm:$0xff] }
 0x143   : > { %1033 = vmatmul.f32.gmra.mxu0 %v4062_v18  ;;  %1086 = vmatmul.f32.gmra.mxu1 %v4061_v46  ;;  %v638_v46 = vpop.f32.mrf.mxu1  ;;  %v4069_v18 = vmax.f32 %v3355_v38, 0.0 }
 0x144   : > { %1139 = vmatmul.f32.gmra.mxu2 %v4063_v52  ;;  %v3359_v30 = vpop.f32.mrf.mxu3  ;;  %v939_v52 = vld [vmem:[#allocation8 + $0x2c8] sm:$0xff]  ;;  %1257 = vmatpush.msra.mxu0 %v855_v57  ;;  %v694_v47 = vpop.f32.mrf.mxu2  ;;  %v3390_v57 = vadd.f32 %v3312_v16, %v3176_v61  ;;  %v969_v16 = vld [vmem:[#allocation8 + $0x3b8] sm:$0xff]  ;;  %v3406_v13 = vadd.f32 %v638_v46, %v3208_v35  ;;  %v4082_v29 = vmax.f32 %v3412_v41, 0.0 }
 0x145   : > { %1377 = vmatpush.msra.mxu2 %v939_v52  ;;  %1443 = vmatpush.msrb.mxu3 %v969_v16  ;;  %v3416_v16 = vadd.f32 %v3335_v22, %v3176_v61  ;;  %v903_v46 = vld [vmem:[#allocation8 + $0x1a8] sm:$0xff] }
 0x146   : > { %1258 = vmatpush.msra.mxu0 %v853_v33  ;;  %v4080_v39 = vmax.f32 %v3406_v13, 0.0  ;;  %v967_v22 = vld [vmem:[#allocation8 + $0x3a8] sm:$0xff] }
 0x147   : > { %v4079_v11 = vmax.f32 %v3416_v16, 0.0  ;;  %1444 = vmatpush.msrb.mxu3 %v967_v22  ;;  %v3441_v22 = vadd.f32 %v3359_v30, %v3176_v61  ;;  %v965_v61 = vld [vmem:[#allocation8 + $0x398] sm:$0xff]  ;;  %v891_v30 = vld [vmem:[#allocation8 + $0x148] sm:$0xff] }
 0x148   : > { %1259 = vmatpush.msra.mxu0 %v851_v26  ;;  %v4072_v26 = vmax.f32 %v3390_v57, 0.0 }
 0x149   : > { %v4085_v62 = vmax.f32 %v3441_v22, 0.0  ;;  %1445 = vmatpush.msrb.mxu3 %v965_v61 }
 0x14b   : > { %1036 = vmatmul.f32.gmra.mxu0 %v4070_v19  ;;  %1089 = vmatmul.f32.gmra.mxu1 %v4069_v18  ;;  %v4075_v18 = vmax.f32 %v3386_v58, 0.0  ;;  %v641_v19 = vpop.f32.mrf.mxu1 }
 0x14c   : > { %1142 = vmatmul.f32.gmra.mxu2 %v4068_v48  ;;  %v738_v52 = vpop.f32.mrf.mxu3  ;;  %v937_v48 = vld [vmem:[#allocation8 + $0x2b8] sm:$0xff] }
 0x14d   : > { %v3393_v33 = vadd.f32 %v738_v52, %v3373_v43  ;;  %1378 = vmatpush.msra.mxu2 %v937_v48  ;;  %v697_v52 = vpop.f32.mrf.mxu2 }
 0x14f   : > { %v4071_v60 = vmax.f32 %v3393_v33, 0.0 }
 0x151   : > { %1195 = vmatmul.f32.vlgmr.msra.gmra.mxu3 %v4071_v60  ;;  %v905_v60 = vld [vmem:[#allocation8 + $0x1b8] sm:$0xff] }
 0x152   : > { %1313 = vmatpush.msra.mxu1 %v905_v60 }
 0x153   : > { %1039 = vmatmul.f32.gmra.mxu0 %v4072_v26  ;;  %1092 = vmatmul.f32.gmra.mxu1 %v4073_v34  ;;  %v644_v60 = vpop.f32.mrf.mxu1 }
 0x154   : > { %1145 = vmatmul.f32.gmra.mxu2 %v4075_v18  ;;  %v741_v48 = vpop.f32.mrf.mxu3  ;;  %1314 = vmatpush.msra.mxu1 %v903_v46  ;;  %v935_v18 = vld [vmem:[#allocation8 + $0x2a8] sm:$0xff]  ;;  %v3432_v46 = vadd.f32 %v641_v19, %v3208_v35 }
 0x155   : > { %v3419_v26 = vadd.f32 %v741_v48, %v3373_v43  ;;  %1379 = vmatpush.msra.mxu2 %v935_v18  ;;  %v899_v48 = vld [vmem:[#allocation8 + $0x188] sm:$0xff] }
 0x156   : > { %1315 = vmatpush.msra.mxu1 %v901_v27  ;;  %v897_v27 = vld [vmem:[#allocation8 + $0x178] sm:$0xff]  ;;  %v895_v19 = vld [vmem:[#allocation8 + $0x168] sm:$0xff] }
 0x157   : > { %v4078_v34 = vmax.f32 %v3419_v26, 0.0  ;;  %1380 = vmatpush.msra.mxu2 %v933_v0 }
 0x158   : > { %1316 = vmatpush.msra.mxu1 %v899_v48  ;;  %v893_v48 = vld [vmem:[#allocation8 + $0x158] sm:$0xff] }
 0x159   : > { %1198 = vmatmul.f32.gmra.mxu3 %v4078_v34  ;;  %v3437_v34 = vadd.f32 %v694_v47, %v3266_v17  ;;  %1381 = vmatpush.msra.mxu2 %v931_v53 }
 0x15a   : > { %1317 = vmatpush.msra.mxu1 %v897_v27  ;;  %v3462_v27 = vadd.f32 %v697_v52, %v3266_v17  ;;  %v885_v52 = vld [vmem:[#allocation8 + $0x118] sm:$0xff] }
 0x15b   : > { %1042 = vmatmul.f32.gmra.mxu0 %v4079_v11  ;;  %1095 = vmatmul.f32.gmra.mxu1 %v4080_v39  ;;  %v700_v39 = vpop.f32.mrf.mxu2  ;;  %v4089_v47 = vmax.f32 %v3437_v34, 0.0 }
 0x15c   : > { %1148 = vmatmul.f32.gmra.mxu2 %v4082_v29  ;;  %v744_v18 = vpop.f32.mrf.mxu3  ;;  %v4086_v29 = vmax.f32 %v3432_v46, 0.0  ;;  %1318 = vmatpush.msra.mxu1 %v895_v19  ;;  %v647_v19 = vpop.f32.mrf.mxu1 }
 0x15d   : > { %v3444_v11 = vadd.f32 %v744_v18, %v3373_v43  ;;  %v3457_v18 = vadd.f32 %v644_v60, %v3208_v35 }
 0x15e   : > { %1319 = vmatpush.msra.mxu1 %v893_v48  ;;  %v889_v48 = vld [vmem:[#allocation8 + $0x138] sm:$0xff] }
 0x15f   : > { %v4087_v9 = vmax.f32 %v3444_v11, 0.0  ;;  %v4092_v60 = vmax.f32 %v3457_v18, 0.0 }
 0x160   : > { %1320 = vmatpush.msra.mxu1 %v891_v30  ;;  %v963_v30 = vld [vmem:[#allocation8 + $0x388] sm:$0xff] }
 0x161   : > { %1201 = vmatmul.f32.gmra.mxu3 %v4087_v9 }
 0x162   : > { %1321 = vmatpush.msra.mxu1 %v889_v48  ;;  %1446 = vmatpush.msrb.mxu3 %v963_v30 }
 0x163   : > { %1045 = vmatmul.f32.gmra.mxu0 %v4085_v62  ;;  %1098 = vmatmul.f32.gmra.mxu1 %v4086_v29  ;;  %v887_v62 = vld [vmem:[#allocation8 + $0x128] sm:$0xff]  ;;  %v703_v9 = vpop.f32.mrf.mxu2 }
 0x164   : > { %1151 = vmatmul.f32.gmra.mxu2 %v4089_v47  ;;  %v747_v0 = vpop.f32.mrf.mxu3  ;;  %v4091_v47 = vmax.f32 %v3462_v27, 0.0  ;;  %1322 = vmatpush.msra.mxu1 %v887_v62  ;;  %v3482_v62 = vadd.f32 %v700_v39, %v3266_v17 }
 0x165   : > { %v3465_v61 = vadd.f32 %v747_v0, %v3373_v43  ;;  %v3477_v0 = vadd.f32 %v647_v19, %v3208_v35 }
 0x166   : > { %1323 = vmatpush.msra.mxu1 %v885_v52  ;;  %v650_v52 = vpop.f32.mrf.mxu1  ;;  %v4096_v19 = vmax.f32 %v3482_v62, 0.0 }
 0x167   : > { %v4095_v29 = vmax.f32 %v3465_v61, 0.0  ;;  %v4094_v2 = vmax.f32 %v3477_v0, 0.0 }
 0x168   : > { %1324 = vmatpush.msra.mxu1 %v883_v37  ;;  %v3492_v39 = vpop.f32.mrf.mxu0  ;;  %v3499_v37 = vadd.f32 %v650_v52, %v3208_v35  ;;  %v959_v52 = vld [vmem:[#allocation8 + $0x368] sm:$0xff] }
 0x169   : > { %1204 = vmatmul.f32.gmra.mxu3 %v4095_v29  ;;  %v927_v29 = vld [vmem:[#allocation8 + $0x268] sm:$0xff] }
 0x16b   : > { %1101 = vmatmul.f32.gmra.mxu1 %v4092_v60  ;;  %1260 = vmatmul.f32.vlgmr.msra.gmra.mxu0 %v786_v3  ;;  %v929_v3 = vld [vmem:[#allocation8 + $0x278] sm:$0xff] }
 0x16c   : > { %1154 = vmatmul.f32.gmra.mxu2 %v4091_v47  ;;  %v750_v53 = vpop.f32.mrf.mxu3  ;;  %v706_v47 = vpop.f32.mrf.mxu2  ;;  %v961_v60 = vld [vmem:[#allocation8 + $0x378] sm:$0xff] }
 0x16d   : > { %v3485_v48 = vadd.f32 %v750_v53, %v3373_v43  ;;  %1382 = vmatpush.msra.mxu2 %v929_v3  ;;  %1447 = vmatpush.msrb.mxu3 %v961_v60  ;;  %v3504_v3 = vadd.f32 %v703_v9, %v3266_v17 }
 0x16f   : > { %v4093_v30 = vmax.f32 %v3485_v48, 0.0  ;;  %v4099_v14 = vmax.f32 %v3504_v3, 0.0  ;;  %1383 = vmatpush.msra.mxu2 %v927_v29  ;;  %1448 = vmatpush.msrb.mxu3 %v959_v52  ;;  %v3524_v29 = vadd.f32 %v706_v47, %v3266_v17 }
 0x171   : > { %1207 = vmatmul.f32.gmra.mxu3 %v4093_v30 }
 0x173   : > { %1104 = vmatmul.f32.gmra.mxu1 %v4094_v2  ;;  %1263 = vmatmul.f32.gmra.mxu0 %v790_v28  ;;  %v4098_v2 = vmax.f32 %v3499_v37, 0.0  ;;  %v653_v28 = vpop.f32.mrf.mxu1 }
 0x174   : > { %1157 = vmatmul.f32.gmra.mxu2 %v4096_v19  ;;  %v753_v53 = vpop.f32.mrf.mxu3  ;;  %v3519_v9 = vadd.f32 %v653_v28, %v3208_v35  ;;  %v4103_v35 = vmax.f32 %v3524_v29, 0.0  ;;  %v957_v28 = vld [vmem:[#allocation8 + $0x358] sm:$0xff] }
 0x175   : > { %v3507_v60 = vadd.f32 %v753_v53, %v3373_v43  ;;  %v709_v53 = vpop.f32.mrf.mxu2  ;;  %1449 = vmatpush.msrb.mxu3 %v957_v28 }
 0x176   : > { %v4102_v20 = vmax.f32 %v3519_v9, 0.0 }
 0x177   : > { %v4097_v30 = vmax.f32 %v3507_v60, 0.0 }
 0x179   : > { %1210 = vmatmul.f32.gmra.mxu3 %v4097_v30  ;;  %v3526_v30 = vpop.f32.mrf.mxu0 }
 0x17b   : > { %1107 = vmatmul.f32.gmra.mxu1 %v4098_v2  ;;  %1266 = vmatmul.f32.gmra.mxu0 %v794_v21  ;;  %v925_v21 = vld [vmem:[#allocation8 + $0x258] sm:$0xff] }
 0x17c   : > { %1160 = vmatmul.f32.gmra.mxu2 %v4099_v14  ;;  %v756_v19 = vpop.f32.mrf.mxu3  ;;  %v923_v14 = vld [vmem:[#allocation8 + $0x248] sm:$0xff] }
 0x17d   : > { %v3529_v52 = vadd.f32 %v756_v19, %v3373_v43  ;;  %1384 = vmatpush.msra.mxu2 %v925_v21  ;;  %v3543_v19 = vadd.f32 %v709_v53, %v3266_v17  ;;  %v921_v21 = vld [vmem:[#allocation8 + $0x238] sm:$0xff]  ;;  %v712_v44 = vpop.f32.mrf.mxu2  ;;  %v955_v53 = vld [vmem:[#allocation8 + $0x348] sm:$0xff] }
 0x17e   : > { %1450 = vmatpush.msrb.mxu3 %v955_v53 }
 0x17f   : > { %v4100_v2 = vmax.f32 %v3529_v52, 0.0  ;;  %1385 = vmatpush.msra.mxu2 %v923_v14  ;;  %v919_v14 = vld [vmem:[#allocation8 + $0x228] sm:$0xff]  ;;  %v4106_v31 = vmax.f32 %v3543_v19, 0.0 }
 0x181   : > { %1213 = vmatmul.f32.gmra.mxu3 %v4100_v2  ;;  %1386 = vmatpush.msra.mxu2 %v921_v21  ;;  %v3548_v28 = vpop.f32.mrf.mxu0 }
 0x183   : > { %1110 = vmatmul.f32.gmra.mxu1 %v4102_v20  ;;  %1269 = vmatmul.f32.gmra.mxu0 %v798_v50  ;;  %v917_v50 = vld [vmem:[#allocation8 + $0x218] sm:$0xff] }
 0x184   : > { %1163 = vmatmul.f32.gmra.mxu2 %v4103_v35  ;;  %v759_v47 = vpop.f32.mrf.mxu3  ;;  %v915_v35 = vld [vmem:[#allocation8 + $0x208] sm:$0xff] }
 0x185   : > { %v3546_v2 = vadd.f32 %v759_v47, %v3373_v43  ;;  %1387 = vmatpush.msra.mxu2 %v919_v14  ;;  %v4138_v47 = vmax.f32 %v3214_v42, 0.0  ;;  %v3561_v14 = vadd.f32 %v712_v44, %v3266_v17  ;;  %v715_v53 = vpop.f32.mrf.mxu2  ;;  %v4140_v44 = vmax.f32 %v3224_v51, 0.0 }
 0x187   : > { %4137 = vst [vmem:[#allocation19_spill] sm:$0xff] %v3546_v2  ;;  %v4105_v20 = vmax.f32 %v3546_v2, 0.0  ;;  %1388 = vmatpush.msra.mxu2 %v917_v50  ;;  %v4108_v40 = vmax.f32 %v3561_v14, 0.0 }
 0x188   : > { %4139 = vst [vmem:[#allocation20_spill] sm:$0xff] %v3561_v14 }
 0x189   : > { %1216 = vmatmul.f32.gmra.mxu3 %v4105_v20  ;;  %1389 = vmatpush.msra.mxu2 %v915_v35  ;;  %v3567_v20 = vpop.f32.mrf.mxu1  ;;  %v3570_v42 = vpop.f32.mrf.mxu0 }
 0x18b   : > { %1272 = vmatmul.f32.gmra.mxu0 %v802_v45  ;;  %1325 = vmatmul.f32.vlgmr.msra.gmra.mxu1 %v4138_v47  ;;  %v953_v45 = vld [vmem:[#allocation8 + $0x338] sm:$0xff]  ;;  %v4141_v47 = vmax.f32 %v3227_v63, 0.0  ;;  %v951_v63 = vld [vmem:[#allocation8 + $0x328] sm:$0xff] }
 0x18c   : > { %1166 = vmatmul.f32.gmra.mxu2 %v4106_v31  ;;  %v762_v21 = vpop.f32.mrf.mxu3  ;;  %1451 = vmatpush.msrb.mxu3 %v953_v45 }
 0x18d   : > { %v3564_v2 = vadd.f32 %v762_v21, %v3373_v43  ;;  %v3581_v21 = vadd.f32 %v715_v53, %v3266_v17  ;;  %v718_v51 = vpop.f32.mrf.mxu2  ;;  %v4143_v53 = vmax.f32 %v3237_v49, 0.0  ;;  %v949_v49 = vld [vmem:[#allocation8 + $0x318] sm:$0xff] }
 0x18e   : > { %1452 = vmatpush.msrb.mxu3 %v951_v63 }
 0x18f   : > { %v4107_v50 = vmax.f32 %v3564_v2, 0.0  ;;  %v4114_v45 = vmax.f32 %v3581_v21, 0.0 }
 0x190   : > { %1453 = vmatpush.msrb.mxu3 %v949_v49  ;;  %v4150_v49 = vmax.f32 %v3263_v15, 0.0  ;;  %v1549_v15 = vld [vmem:[#allocation10 + $0x68] sm:$0xff] }
 0x191   : > { %1219 = vmatmul.f32.gmra.mxu3 %v4107_v50 }
 0x193   : > { %1275 = vmatmul.f32.gmra.mxu0 %v4140_v44  ;;  %1328 = vmatmul.f32.gmra.mxu1 %v4141_v47  ;;  %v3590_v44 = vpop.f32.mrf.mxu1  ;;  %v3592_v47 = vpop.f32.mrf.mxu0 }
 0x194   : > { %1169 = vmatmul.f32.gmra.mxu2 %v4108_v40  ;;  %v765_v35 = vpop.f32.mrf.mxu3 }
 0x195   : > { %v3584_v31 = vadd.f32 %v765_v35, %v3373_v43  ;;  %v4144_v35 = vmax.f32 %v3240_v4, 0.0  ;;  %v4146_v4 = vmax.f32 %v3250_v5, 0.0  ;;  %v947_v5 = vld [vmem:[#allocation8 + $0x308] sm:$0xff] }
 0x196   : > { %1454 = vmatpush.msrb.mxu3 %v947_v5 }
 0x197   : > { %4142 = vst [vmem:[#allocation21_spill] sm:$0xff] %v3584_v31  ;;  %v4110_v50 = vmax.f32 %v3584_v31, 0.0  ;;  %v3601_v31 = vadd.f32 %v718_v51, %v3266_v17 }
 0x199   : > { %1222 = vmatmul.f32.gmra.mxu3 %v4110_v50  ;;  %4145 = vst [vmem:[#allocation22_spill] sm:$0xff] %v3601_v31  ;;  %v4113_v14 = vmax.f32 %v3601_v31, 0.0 }
 0x19b   : > { %1278 = vmatmul.f32.gmra.mxu0 %v4143_v53  ;;  %1331 = vmatmul.f32.gmra.mxu1 %v4144_v35  ;;  %v4147_v53 = vmax.f32 %v3253_v8, 0.0  ;;  %v3614_v17 = vpop.f32.mrf.mxu1  ;;  %v3618_v51 = vpop.f32.mrf.mxu0  ;;  %v4149_v8 = vmax.f32 %v3271_v10, 0.0 }
 0x19c   : > { %1172 = vmatmul.f32.gmra.mxu2 %v4114_v45  ;;  %v768_v40 = vpop.f32.mrf.mxu3 }
 0x19d   : > { %v3604_v50 = vadd.f32 %v768_v40, %v3373_v43 }
 0x19f   : > { %v4112_v63 = vmax.f32 %v3604_v50, 0.0 }
 0x1a1   : > { %1225 = vmatmul.f32.gmra.mxu3 %v4112_v63 }
 0x1a3   : > { %1281 = vmatmul.f32.gmra.mxu0 %v4146_v4  ;;  %1334 = vmatmul.f32.gmra.mxu1 %v4147_v53  ;;  %v4151_v4 = vmax.f32 %v3274_v23, 0.0  ;;  %v3635_v45 = vpop.f32.mrf.mxu1  ;;  %v1548_v23 = vld [vmem:[#allocation10 + $0x60] sm:$0xff] }
 0x1a4   : > { %1175 = vmatmul.f32.gmra.mxu2 %v4113_v14  ;;  %v771_v40 = vpop.f32.mrf.mxu3  ;;  %v1551_v14 = vld [vmem:[#allocation10 + $0x78] sm:$0xff] }
 0x1a5   : > { %v3621_v35 = vadd.f32 %v771_v40, %v3373_v43  ;;  %1572 = vmatpush.msrb.mxu0 %v1551_v14  ;;  %v4154_v14 = vmax.f32 %v3285_v32, 0.0  ;;  %v1545_v32 = vld [vmem:[#allocation10 + $0x48] sm:$0xff] }
 0x1a7   : > { %4148 = vst [vmem:[#allocation23_spill] sm:$0xff] %v3621_v35  ;;  %v4115_v63 = vmax.f32 %v3621_v35, 0.0  ;;  %v3637_v35 = vpop.f32.mrf.mxu0 }
 0x1a9   : > { %1228 = vmatmul.f32.gmra.mxu3 %v4115_v63  ;;  %v1550_v63 = vld [vmem:[#allocation10 + $0x70] sm:$0xff] }
 0x1aa   : > { %1573 = vmatpush.msrb.mxu0 %v1550_v63 }
 0x1ab   : > { %1284 = vmatmul.f32.gmra.mxu0 %v4149_v8  ;;  %1337 = vmatmul.f32.gmra.mxu1 %v4150_v49  ;;  %v4153_v8 = vmax.f32 %v3294_v12, 0.0  ;;  %v4155_v49 = vmax.f32 %v3297_v56, 0.0  ;;  %v3656_v12 = vpop.f32.mrf.mxu1  ;;  %v1567_v56 = vld [vmem:[#allocation10 + $0xf8] sm:$0xff] }
 0x1ac   : > { %1390 = vmatmul.f32.vlgmr.msra.gmra.mxu2 %v4151_v4  ;;  %v774_v53 = vpop.f32.mrf.mxu3  ;;  %1574 = vmatpush.msrb.mxu0 %v1549_v15 }
 0x1ad   : > { %v3633_v40 = vadd.f32 %v774_v53, %v3373_v43  ;;  %v1547_v53 = vld [vmem:[#allocation10 + $0x58] sm:$0xff]  ;;  %1637 = vmatpush.msrb.mxu1 %v1567_v56 }
 0x1ae   : > { %1575 = vmatpush.msrb.mxu0 %v1548_v23  ;;  %v1544_v23 = vld [vmem:[#allocation10 + $0x40] sm:$0xff] }
 0x1af   : > { %4152 = vst [vmem:[#allocation24_spill] sm:$0xff] %v3633_v40  ;;  %v4118_v10 = vmax.f32 %v3633_v40, 0.0  ;;  %v3640_v5 = vpop.f32.mrf.mxu2  ;;  %v1546_v40 = vld [vmem:[#allocation10 + $0x50] sm:$0xff] }
 0x1b0   : > { %1576 = vmatpush.msrb.mxu0 %v1547_v53  ;;  %v1543_v53 = vld [vmem:[#allocation10 + $0x38] sm:$0xff] }
 0x1b1   : > { %1231 = vmatmul.f32.gmra.mxu3 %v4118_v10 }
 0x1b2   : > { %1577 = vmatpush.msrb.mxu0 %v1546_v40 }
 0x1b3   : > { %1287 = vmatmul.f32.gmra.mxu0 %v4153_v8  ;;  %1340 = vmatmul.f32.gmra.mxu1 %v4154_v14  ;;  %v3658_v8 = vpop.f32.mrf.mxu0  ;;  %v4156_v14 = vmax.f32 %v3315_v6, 0.0  ;;  %v1541_v6 = vld [vmem:[#allocation10 + $0x28] sm:$0xff] }
 0x1b4   : > { %1393 = vmatmul.f32.gmra.mxu2 %v4155_v49  ;;  %v777_v4 = vpop.f32.mrf.mxu3  ;;  %1578 = vmatpush.msrb.mxu0 %v1545_v32  ;;  %v4157_v49 = vmax.f32 %v3308_v59, 0.0  ;;  %v1566_v59 = vld [vmem:[#allocation10 + $0xf0] sm:$0xff] }
 0x1b5   : > { %v3651_v63 = vadd.f32 %v777_v4, %v3373_v43  ;;  %v4158_v4 = vmax.f32 %v3320_v7, 0.0  ;;  %v1540_v7 = vld [vmem:[#allocation10 + $0x20] sm:$0xff]  ;;  %1638 = vmatpush.msrb.mxu1 %v1566_v59 }
 0x1b6   : > { %1579 = vmatpush.msrb.mxu0 %v1544_v23 }
 0x1b7   : > { %v4120_v15 = vmax.f32 %v3651_v63, 0.0  ;;  %v3654_v10 = vpop.f32.mrf.mxu2 }
 0x1b8   : > { %1580 = vmatpush.msrb.mxu0 %v1543_v53  ;;  %v1539_v53 = vld [vmem:[#allocation10 + $0x18] sm:$0xff] }
 0x1b9   : > { %1234 = vmatmul.f32.gmra.mxu3 %v4120_v15  ;;  %v1542_v15 = vld [vmem:[#allocation10 + $0x30] sm:$0xff] }
 0x1ba   : > { %1581 = vmatpush.msrb.mxu0 %v1542_v15  ;;  %v4162_v15 = vmax.f32 %v3342_v25, 0.0  ;;  %v1536_v25 = vld [vmem:[#allocation10] sm:$0xff] }
 0x1bb   : > { %1290 = vmatmul.f32.gmra.mxu0 %v4156_v14  ;;  %1343 = vmatmul.f32.gmra.mxu1 %v4157_v49  ;;  %v3676_v14 = vpop.f32.mrf.mxu1  ;;  %v3678_v23 = vpop.f32.mrf.mxu0  ;;  %v4160_v49 = vmax.f32 %v3339_v24, 0.0  ;;  %v1537_v24 = vld [vmem:[#allocation10 + $0x8] sm:$0xff] }
 0x1bc   : > { %1396 = vmatmul.f32.gmra.mxu2 %v4158_v4  ;;  %v780_v40 = vpop.f32.mrf.mxu3  ;;  %1582 = vmatpush.msrb.mxu0 %v1541_v6  ;;  %v4161_v4 = vmax.f32 %v3331_v54, 0.0  ;;  %v1538_v6 = vld [vmem:[#allocation10 + $0x10] sm:$0xff]  ;;  %v1565_v54 = vld [vmem:[#allocation10 + $0xe8] sm:$0xff] }
 0x1bd   : > { %v3669_v31 = vadd.f32 %v780_v40, %v3373_v43  ;;  %1639 = vmatpush.msrb.mxu1 %v1565_v54 }
 0x1be   : > { %1583 = vmatpush.msrb.mxu0 %v1540_v7  ;;  %v4163_v7 = vmax.f32 %v3367_v1, 0.0  ;;  %v4167_v1 = vmax.f32 %v3390_v57, 0.0  ;;  %v4170_v57 = vmax.f32 %v3419_v26, 0.0 }
 0x1bf   : > { %4159 = vst [vmem:[#allocation25_spill] sm:$0xff] %v3669_v31  ;;  %v4121_v32 = vmax.f32 %v3669_v31, 0.0  ;;  %v3672_v56 = vpop.f32.mrf.mxu2 }
 0x1c0   : > { %1584 = vmatpush.msrb.mxu0 %v1539_v53  ;;  %v4166_v53 = vmax.f32 %v3393_v33, 0.0  ;;  %v3723_v33 = vld [vmem:[%s4050_s4] sm:$0x3] }
 0x1c1   : > { %1237 = vmatmul.f32.gmra.mxu3 %v4121_v32 }
 0x1c2   : > { %1585 = vmatpush.msrb.mxu0 %v1538_v6  ;;  %v1564_v6 = vld [vmem:[#allocation10 + $0xe0] sm:$0xff] }
 0x1c3   : > { %1293 = vmatmul.f32.gmra.mxu0 %v4160_v49  ;;  %1346 = vmatmul.f32.gmra.mxu1 %v4161_v4  ;;  %v3698_v49 = vpop.f32.mrf.mxu1  ;;  %v4165_v4 = vmax.f32 %v3363_v36, 0.0 }
 0x1c4   : > { %1399 = vmatmul.f32.gmra.mxu2 %v4162_v15  ;;  %v783_v40 = vpop.f32.mrf.mxu3  ;;  %1586 = vmatpush.msrb.mxu0 %v1537_v24  ;;  %v3702_v15 = vpop.f32.mrf.mxu0  ;;  %v4169_v24 = vmax.f32 %v3386_v58, 0.0  ;;  %v3728_v58 = vperm.slane %v3723_v33, 0 }
 0x1c5   : > { %v3687_v32 = vadd.f32 %v783_v40, %v3373_v43  ;;  %v4164_v43 = vmax.f32 %v3355_v38, 0.0  ;;  %1640 = vmatpush.msrb.mxu1 %v1564_v6  ;;  %v4168_v38 = vmax.f32 %v3380_v55, 0.0  ;;  %v1563_v55 = vld [vmem:[#allocation10 + $0xd8] sm:$0xff] }
 0x1c6   : > { %1587 = vmatpush.msrb.mxu0 %v1536_v25 }
 0x1c7   : > { %v849_v59 = vmax.f32 %v3687_v32, 0.0  ;;  %v3690_v31 = vpop.f32.mrf.mxu2  ;;  %1641 = vmatpush.msrb.mxu1 %v1563_v55  ;;  %v4175_v55 = vmax.f32 %v3441_v22, 0.0  ;;  %v1561_v22 = vld [vmem:[#allocation10 + $0xc8] sm:$0xff] }
 0x1c9   : > { %1240 = vmatmul.f32.gmra.mxu3 %v849_v59 }
 0x1cb   : > { %1296 = vmatmul.f32.gmra.mxu0 %v4163_v7  ;;  %1349 = vmatmul.f32.gmra.mxu1 %v4164_v43  ;;  %v3714_v54 = vpop.f32.mrf.mxu1  ;;  %v4171_v43 = vmax.f32 %v3416_v16, 0.0  ;;  %v4174_v16 = vmax.f32 %v3444_v11, 0.0 }
 0x1cc   : > { %1402 = vmatmul.f32.gmra.mxu2 %v4165_v4  ;;  %v3716_v25 = vpop.f32.mrf.mxu0  ;;  %v4172_v4 = vmax.f32 %v3406_v13, 0.0  ;;  %v1562_v13 = vld [vmem:[#allocation10 + $0xd0] sm:$0xff] }
 0x1cd   : > { %1642 = vmatpush.msrb.mxu1 %v1562_v13  ;;  %v4179_v13 = vmax.f32 %v3457_v18, 0.0 }
 0x1cf   : > { %v3704_v40 = vpop.f32.mrf.mxu2  ;;  %1643 = vmatpush.msrb.mxu1 %v1561_v22  ;;  %v4185_v22 = vmax.f32 %v3499_v37, 0.0  ;;  %v4187_v37 = vmax.f32 %v3529_v52, 0.0 }
 0x1d1   : > { %1455 = vmatmul.f32.vlgmr.msrb.gmra.mxu3 %v4166_v53  ;;  %v4173_v53 = vmax.f32 %v3412_v41, 0.0 }
 0x1d3   : > { %1299 = vmatmul.f32.gmra.mxu0 %v4167_v1  ;;  %1352 = vmatmul.f32.gmra.mxu1 %v4168_v38  ;;  %v1002_v1 = vadd.f32 %v3492_v39, %v3728_v58  ;;  %v3740_v38 = vpop.f32.mrf.mxu1  ;;  %v4176_v39 = vmax.f32 %v3432_v46, 0.0 }
 0x1d4   : > { %1405 = vmatmul.f32.gmra.mxu2 %v4169_v24  ;;  %v1196_v36 = vpop.f32.mrf.mxu3 }
 0x1d5   : > { %v1067_v24 = vadd.f32 %v3567_v20, %v1002_v1  ;;  %v1005_v20 = vadd.f32 %v3526_v30, %v3728_v58  ;;  %v4180_v30 = vmax.f32 %v3462_v27, 0.0  ;;  %v4182_v27 = vmax.f32 %v3477_v0, 0.0 }
 0x1d6   : > { %v4184_v0 = vmax.f32 %v3507_v60, 0.0 }
 0x1d7   : > { %v3718_v7 = vpop.f32.mrf.mxu2  ;;  %v1132_v41 = vadd.f32 %v3640_v5, %v1067_v24  ;;  %v1070_v1 = vadd.f32 %v3590_v44, %v1005_v20  ;;  %v4178_v5 = vmax.f32 %v3465_v61, 0.0  ;;  %v1008_v61 = vadd.f32 %v3548_v28, %v3728_v58 }
 0x1d8   : > { %v4183_v28 = vmax.f32 %v3482_v62, 0.0 }
 0x1d9   : > { %1458 = vmatmul.f32.gmra.mxu3 %v4170_v57  ;;  %v3743_v57 = vpop.f32.mrf.mxu0 }
 0x1db   : > { %1302 = vmatmul.f32.gmra.mxu0 %v4171_v43  ;;  %1355 = vmatmul.f32.gmra.mxu1 %v4172_v4  ;;  %v4177_v43 = vmax.f32 %v3437_v34, 0.0  ;;  %v3761_v24 = vpop.f32.mrf.mxu1  ;;  %v1135_v34 = vadd.f32 %v3654_v10, %v1070_v1  ;;  %v4181_v10 = vmax.f32 %v3485_v48, 0.0 }
 0x1dc   : > { %1408 = vmatmul.f32.gmra.mxu2 %v4173_v53  ;;  %v1199_v6 = vpop.f32.mrf.mxu3  ;;  %v1197_v53 = vadd.f32 %v1196_v36, %v1132_v41 }
 0x1dd   : > { %v1200_v36 = vadd.f32 %v1199_v6, %v1135_v34 }
 0x1df   : > { %v3738_v26 = vpop.f32.mrf.mxu2 }
 0x1e1   : > { %1461 = vmatmul.f32.gmra.mxu3 %v4174_v16  ;;  %v1504_v16 = vmax.f32 %v1197_v53, 0.0  ;;  %v3764_v46 = vpop.f32.mrf.mxu0 }
 0x1e3   : > { %1305 = vmatmul.f32.gmra.mxu0 %v4175_v55  ;;  %1358 = vmatmul.f32.gmra.mxu1 %v4176_v39  ;;  %v1073_v55 = vadd.f32 %v3614_v17, %v1008_v61  ;;  %v1506_v39 = vmax.f32 %v1200_v36, 0.0  ;;  %v3780_v20 = vpop.f32.mrf.mxu1  ;;  %v1011_v17 = vadd.f32 %v3570_v42, %v3728_v58  ;;  %v4186_v42 = vmax.f32 %v3504_v3, 0.0  ;;  %v1558_v36 = vld [vmem:[#allocation10 + $0xb0] sm:$0xff] }
 0x1e4   : > { %1411 = vmatmul.f32.gmra.mxu2 %v4177_v43  ;;  %v1202_v4 = vpop.f32.mrf.mxu3  ;;  %v1560_v43 = vld [vmem:[#allocation10 + $0xc0] sm:$0xff] }
 0x1e5   : > { %1644 = vmatpush.msrb.mxu1 %v1560_v43  ;;  %v1138_v18 = vadd.f32 %v3672_v56, %v1073_v55  ;;  %v1076_v56 = vadd.f32 %v3635_v45, %v1011_v17  ;;  %v1014_v45 = vadd.f32 %v3592_v47, %v3728_v58  ;;  %v4189_v47 = vmax.f32 %v3524_v29, 0.0 }
 0x1e7   : > { %v3756_v11 = vpop.f32.mrf.mxu2  ;;  %v1203_v48 = vadd.f32 %v1202_v4, %v1138_v18  ;;  %v1141_v62 = vadd.f32 %v3690_v31, %v1076_v56  ;;  %v1079_v31 = vadd.f32 %v3656_v12, %v1014_v45  ;;  %v1017_v12 = vadd.f32 %v3618_v51, %v3728_v58 }
 0x1e9   : > { %1464 = vmatmul.f32.gmra.mxu3 %v4178_v5  ;;  %v3786_v53 = vpop.f32.mrf.mxu0  ;;  %v1559_v5 = vld [vmem:[#allocation10 + $0xb8] sm:$0xff]  ;;  %v1144_v3 = vadd.f32 %v3704_v40, %v1079_v31  ;;  %v1082_v43 = vadd.f32 %v3676_v14, %v1017_v12  ;;  %v4196_v31 = vld [vmem:[#allocation21_spill] sm:$0xff] }
 0x1ea   : > { %1645 = vmatpush.msrb.mxu1 %v1559_v5  ;;  %v1556_v5 = vld [vmem:[#allocation10 + $0xa0] sm:$0xff] }
 0x1eb   : > { %1361 = vmatmul.f32.gmra.mxu1 %v4179_v13  ;;  %1588 = vmatmul.f32.vlgmr.msrb.gmra.mxu0 %v1504_v16  ;;  %v1508_v16 = vmax.f32 %v1203_v48, 0.0  ;;  %v3798_v13 = vpop.f32.mrf.mxu1  ;;  %v1147_v29 = vadd.f32 %v3718_v7, %v1082_v43  ;;  %v1020_v48 = vadd.f32 %v3637_v35, %v3728_v58  ;;  %v1554_v43 = vld [vmem:[#allocation10 + $0x90] sm:$0xff] }
 0x1ec   : > { %1414 = vmatmul.f32.gmra.mxu2 %v4180_v30  ;;  %v1205_v44 = vpop.f32.mrf.mxu3  ;;  %1646 = vmatpush.msrb.mxu1 %v1558_v36 }
 0x1ed   : > { %v1206_v34 = vadd.f32 %v1205_v44, %v1141_v62  ;;  %v4188_v44 = vmax.f32 %v3519_v9, 0.0  ;;  %v4190_v9 = vld [vmem:[#allocation19_spill] sm:$0xff]  ;;  %v1085_v56 = vadd.f32 %v3698_v49, %v1020_v48  ;;  %v1023_v49 = vadd.f32 %v3658_v8, %v3728_v58  ;;  %v1553_v48 = vld [vmem:[#allocation10 + $0x88] sm:$0xff] }
 0x1ef   : > { %v3772_v41 = vpop.f32.mrf.mxu2  ;;  %v1510_v61 = vmax.f32 %v1206_v34, 0.0 }
 0x1f1   : > { %1467 = vmatmul.f32.gmra.mxu3 %v4181_v10  ;;  %v3802_v60 = vpop.f32.mrf.mxu0 }
 0x1f3   : > { %1364 = vmatmul.f32.gmra.mxu1 %v4182_v27  ;;  %1591 = vmatmul.f32.gmra.mxu0 %v1506_v39  ;;  %v3818_v52 = vpop.f32.mrf.mxu1  ;;  %v4191_v27 = vmax.f32 %v4190_v9, 0.0 }
 0x1f4   : > { %1417 = vmatmul.f32.gmra.mxu2 %v4183_v28  ;;  %v1208_v6 = vpop.f32.mrf.mxu3  ;;  %v1557_v28 = vld [vmem:[#allocation10 + $0xa8] sm:$0xff] }
 0x1f5   : > { %v1209_v39 = vadd.f32 %v1208_v6, %v1144_v3  ;;  %1647 = vmatpush.msrb.mxu1 %v1557_v28  ;;  %v4192_v6 = vmax.f32 %v3543_v19, 0.0  ;;  %v1150_v19 = vadd.f32 %v3738_v26, %v1085_v56  ;;  %v1555_v26 = vld [vmem:[#allocation10 + $0x98] sm:$0xff]  ;;  %v4198_v3 = vmax.f32 %v3581_v21, 0.0 }
 0x1f7   : > { %v3788_v1 = vpop.f32.mrf.mxu2  ;;  %v1512_v40 = vmax.f32 %v1209_v39, 0.0  ;;  %1648 = vmatpush.msrb.mxu1 %v1556_v5 }
 0x1f9   : > { %1470 = vmatmul.f32.gmra.mxu3 %v4184_v0  ;;  %v3821_v18 = vpop.f32.mrf.mxu0  ;;  %v4193_v0 = vmax.f32 %v3564_v2, 0.0  ;;  %v1088_v2 = vadd.f32 %v3714_v54, %v1023_v49  ;;  %1649 = vmatpush.msrb.mxu1 %v1555_v26  ;;  %v1026_v54 = vadd.f32 %v3678_v23, %v3728_v58  ;;  %v1029_v23 = vadd.f32 %v3702_v15, %v3728_v58 }
 0x1fa   : > { %v1032_v15 = vadd.f32 %v3716_v25, %v3728_v58  ;;  %v1035_v25 = vadd.f32 %v3743_v57, %v3728_v58  ;;  %v1038_v57 = vadd.f32 %v3764_v46, %v3728_v58  ;;  %v1041_v46 = vadd.f32 %v3786_v53, %v3728_v58 }
 0x1fb   : > { %1367 = vmatmul.f32.gmra.mxu1 %v4185_v22  ;;  %1594 = vmatmul.f32.gmra.mxu0 %v1508_v16  ;;  %v3835_v62 = vpop.f32.mrf.mxu1  ;;  %v4194_v22 = vld [vmem:[#allocation20_spill] sm:$0xff]  ;;  %v1091_v39 = vadd.f32 %v3740_v38, %v1026_v54  ;;  %v1044_v53 = vadd.f32 %v3802_v60, %v3728_v58  ;;  %v1047_v60 = vadd.f32 %v3821_v18, %v3728_v58 }
 0x1fc   : > { %1420 = vmatmul.f32.gmra.mxu2 %v4186_v42  ;;  %v1211_v4 = vpop.f32.mrf.mxu3  ;;  %v4195_v42 = vmax.f32 %v4194_v22, 0.0  ;;  %1650 = vmatpush.msrb.mxu1 %v1554_v43 }
 0x1fd   : > { %v1212_v17 = vadd.f32 %v1211_v4, %v1147_v29  ;;  %v1156_v21 = vadd.f32 %v3772_v41, %v1091_v39 }
 0x1fe   : > { %1651 = vmatpush.msrb.mxu1 %v1553_v48 }
 0x1ff   : > { %v3804_v30 = vpop.f32.mrf.mxu2  ;;  %v1514_v16 = vmax.f32 %v1212_v17, 0.0  ;;  %v4202_v17 = vld [vmem:[#allocation23_spill] sm:$0xff] }
 0x200   : > { %v4203_v41 = vmax.f32 %v4202_v17, 0.0 }
 0x201   : > { %1473 = vmatmul.f32.gmra.mxu3 %v4187_v37  ;;  %v3838_v7 = vpop.f32.mrf.mxu0  ;;  %v1153_v37 = vadd.f32 %v3756_v11, %v1088_v2  ;;  %v4199_v11 = vmax.f32 %v3604_v50, 0.0  ;;  %v1094_v50 = vadd.f32 %v3761_v24, %v1029_v23  ;;  %v1731_v23 = vld [vmem:[#allocation11 + $0x68] sm:$0xff] }
 0x203   : > { %1370 = vmatmul.f32.gmra.mxu1 %v4188_v44  ;;  %1597 = vmatmul.f32.gmra.mxu0 %v1510_v61  ;;  %v4197_v61 = vmax.f32 %v4196_v31, 0.0  ;;  %v3850_v36 = vpop.f32.mrf.mxu1  ;;  %v1159_v56 = vadd.f32 %v3788_v1, %v1094_v50  ;;  %v1100_v31 = vadd.f32 %v3798_v13, %v1035_v25  ;;  %v1103_v13 = vadd.f32 %v3818_v52, %v1038_v57 }
 0x204   : > { %1423 = vmatmul.f32.gmra.mxu2 %v4189_v47  ;;  %v1214_v55 = vpop.f32.mrf.mxu3  ;;  %v1106_v52 = vadd.f32 %v3835_v62, %v1041_v46  ;;  %v1726_v46 = vld [vmem:[#allocation11 + $0x40] sm:$0xff] }
 0x205   : > { %v1215_v4 = vadd.f32 %v1214_v55, %v1150_v19  ;;  %v1097_v19 = vadd.f32 %v3780_v20, %v1032_v15 }
 0x207   : > { %v3816_v10 = vpop.f32.mrf.mxu2  ;;  %v1516_v45 = vmax.f32 %v1215_v4, 0.0  ;;  %v1552_v4 = vld [vmem:[#allocation10 + $0x80] sm:$0xff]  ;;  %v1162_v1 = vadd.f32 %v3804_v30, %v1097_v19 }
 0x208   : > { %1652 = vmatpush.msrb.mxu1 %v1552_v4 }
 0x209   : > { %1476 = vmatmul.f32.gmra.mxu3 %v4191_v27  ;;  %v3854_v8 = vpop.f32.mrf.mxu0 }
 0x20b   : > { %1600 = vmatmul.f32.gmra.mxu0 %v1512_v40  ;;  %v4200_v40 = vld [vmem:[#allocation22_spill] sm:$0xff]  ;;  %v3866_v29 = vpop.f32.mrf.mxu1 }
 0x20c   : > { %1426 = vmatmul.f32.gmra.mxu2 %v4192_v6  ;;  %v1217_v51 = vpop.f32.mrf.mxu3  ;;  %v4201_v9 = vmax.f32 %v4200_v40, 0.0 }
 0x20d   : > { %v1218_v47 = vadd.f32 %v1217_v51, %v1153_v37  ;;  %v1165_v37 = vadd.f32 %v3816_v10, %v1100_v31  ;;  %v1732_v10 = vld [vmem:[#allocation11 + $0x70] sm:$0xff] }
 0x20f   : > { %v3830_v14 = vpop.f32.mrf.mxu2  ;;  %v1518_v12 = vmax.f32 %v1218_v47, 0.0 }
 0x211   : > { %1479 = vmatmul.f32.gmra.mxu3 %v4193_v0  ;;  %v3870_v38 = vpop.f32.mrf.mxu0 }
 0x213   : > { %1603 = vmatmul.f32.gmra.mxu0 %v1514_v16  ;;  %v1326_v5 = vpop.f32.mrf.mxu1 }
 0x214   : > { %1429 = vmatmul.f32.gmra.mxu2 %v4195_v42  ;;  %v1220_v35 = vpop.f32.mrf.mxu3  ;;  %v4204_v42 = vld [vmem:[#allocation24_spill] sm:$0xff] }
 0x215   : > { %v1221_v28 = vadd.f32 %v1220_v35, %v1156_v21  ;;  %v4205_v35 = vmax.f32 %v4204_v42, 0.0 }
 0x217   : > { %v3844_v34 = vpop.f32.mrf.mxu2  ;;  %v1520_v51 = vmax.f32 %v1221_v28, 0.0 }
 0x218   : > { %v1171_v50 = vadd.f32 %v3844_v34, %v1106_v52 }
 0x219   : > { %1482 = vmatmul.f32.gmra.mxu3 %v4197_v61  ;;  %v3881_v22 = vpop.f32.mrf.mxu0  ;;  %v4206_v61 = vmax.f32 %v3651_v63, 0.0 }
 0x21b   : > { %1606 = vmatmul.f32.gmra.mxu0 %v1516_v45  ;;  %v1329_v26 = vpop.f32.mrf.mxu1 }
 0x21c   : > { %1432 = vmatmul.f32.gmra.mxu2 %v4198_v3  ;;  %v1223_v44 = vpop.f32.mrf.mxu3 }
 0x21d   : > { %v1224_v0 = vadd.f32 %v1223_v44, %v1159_v56  ;;  %v1733_v44 = vld [vmem:[#allocation11 + $0x78] sm:$0xff] }
 0x21e   : > { %1738 = vmatpush.msrb.mxu2 %v1733_v44 }
 0x21f   : > { %v3858_v55 = vpop.f32.mrf.mxu2  ;;  %v1522_v24 = vmax.f32 %v1224_v0, 0.0 }
 0x220   : > { %1739 = vmatpush.msrb.mxu2 %v1732_v10 }
 0x221   : > { %1485 = vmatmul.f32.gmra.mxu3 %v4199_v11  ;;  %v3892_v3 = vpop.f32.mrf.mxu0  ;;  %v1168_v11 = vadd.f32 %v3830_v14, %v1103_v13  ;;  %v3908_v14 = vperm.slane %v3723_v33, 1 }
 0x222   : > { %1740 = vmatpush.msrb.mxu2 %v1731_v23 }
 0x223   : > { %1609 = vmatmul.f32.gmra.mxu0 %v1518_v12  ;;  %v4207_v12 = vld [vmem:[#allocation25_spill] sm:$0xff]  ;;  %v1332_v43 = vpop.f32.mrf.mxu1  ;;  %v1262_v62 = vadd.f32 %v3838_v7, %v3908_v14  ;;  %v1265_v7 = vadd.f32 %v3854_v8, %v3908_v14  ;;  %v1268_v8 = vadd.f32 %v3870_v38, %v3908_v14  ;;  %v1727_v38 = vld [vmem:[#allocation11 + $0x48] sm:$0xff] }
 0x224   : > { %1435 = vmatmul.f32.gmra.mxu2 %v4201_v9  ;;  %v1226_v27 = vpop.f32.mrf.mxu3  ;;  %v4208_v63 = vmax.f32 %v4207_v12, 0.0 }
 0x225   : > { %v1227_v45 = vadd.f32 %v1226_v27, %v1162_v1  ;;  %v1327_v56 = vadd.f32 %v1326_v5, %v1262_v62  ;;  %v1330_v5 = vadd.f32 %v1329_v26, %v1265_v7  ;;  %v1725_v62 = vld [vmem:[#allocation11 + $0x38] sm:$0xff] }
 0x227   : > { %v3872_v6 = vpop.f32.mrf.mxu2  ;;  %v1524_v20 = vmax.f32 %v1227_v45, 0.0 }
 0x229   : > { %1488 = vmatmul.f32.gmra.mxu3 %v4203_v41  ;;  %v3900_v40 = vpop.f32.mrf.mxu0 }
 0x22b   : > { %1612 = vmatmul.f32.gmra.mxu0 %v1520_v51  ;;  %v1335_v41 = vpop.f32.mrf.mxu1 }
 0x22c   : > { %v1229_v16 = vpop.f32.mrf.mxu3 }
 0x22d   : > { %v1230_v54 = vadd.f32 %v1229_v16, %v1165_v37  ;;  %v1730_v16 = vld [vmem:[#allocation11 + $0x60] sm:$0xff] }
 0x22e   : > { %1741 = vmatpush.msrb.mxu2 %v1730_v16 }
 0x22f   : > { %v1391_v49 = vpop.f32.mrf.mxu2  ;;  %v1526_v39 = vmax.f32 %v1230_v54, 0.0  ;;  %v1271_v54 = vadd.f32 %v3881_v22, %v3908_v14 }
 0x230   : > { %v1392_v0 = vadd.f32 %v1391_v49, %v1327_v56 }
 0x231   : > { %1491 = vmatmul.f32.gmra.mxu3 %v4205_v35  ;;  %v3915_v48 = vpop.f32.mrf.mxu0  ;;  %v1336_v13 = vadd.f32 %v1335_v41, %v1271_v54 }
 0x232   : > { %v1280_v56 = vadd.f32 %v3915_v48, %v3908_v14 }
 0x233   : > { %1615 = vmatmul.f32.gmra.mxu0 %v1522_v24  ;;  %v1338_v35 = vpop.f32.mrf.mxu1 }
 0x234   : > { %v1232_v2 = vpop.f32.mrf.mxu3 }
 0x235   : > { %v1233_v9 = vadd.f32 %v1232_v2, %v1168_v11 }
 0x237   : > { %v1394_v30 = vpop.f32.mrf.mxu2  ;;  %v1528_v28 = vmax.f32 %v1233_v9, 0.0 }
 0x238   : > { %v1395_v45 = vadd.f32 %v1394_v30, %v1330_v5 }
 0x239   : > { %1494 = vmatmul.f32.gmra.mxu3 %v4206_v61  ;;  %v3924_v4 = vpop.f32.mrf.mxu0  ;;  %v1728_v61 = vld [vmem:[#allocation11 + $0x50] sm:$0xff] }
 0x23a   : > { %v1283_v7 = vadd.f32 %v3924_v4, %v3908_v14 }
 0x23b   : > { %1618 = vmatmul.f32.gmra.mxu0 %v1524_v20  ;;  %v1341_v26 = vpop.f32.mrf.mxu1 }
 0x23c   : > { %v1235_v47 = vpop.f32.mrf.mxu3 }
 0x23d   : > { %v1236_v17 = vadd.f32 %v1235_v47, %v1171_v50  ;;  %v1277_v50 = vadd.f32 %v3900_v40, %v3908_v14 }
 0x23f   : > { %v1397_v27 = vpop.f32.mrf.mxu2  ;;  %v1530_v33 = vmax.f32 %v1236_v17, 0.0 }
 0x241   : > { %1497 = vmatmul.f32.gmra.mxu3 %v4208_v63  ;;  %v3929_v37 = vpop.f32.mrf.mxu0 }
 0x243   : > { %1621 = vmatmul.f32.gmra.mxu0 %v1526_v39  ;;  %v1344_v12 = vpop.f32.mrf.mxu1 }
 0x244   : > { %v1238_v21 = vpop.f32.mrf.mxu3 }
 0x247   : > { %v1400_v32 = vpop.f32.mrf.mxu2 }
 0x248   : > { %v1401_v39 = vadd.f32 %v1400_v32, %v1336_v13 }
 0x249   : > { %1500 = vmatmul.f32.gmra.mxu3 %v849_v59  ;;  %v1109_v59 = vadd.f32 %v3850_v36, %v1044_v53  ;;  %v1112_v36 = vadd.f32 %v3866_v29, %v1047_v60  ;;  %v1333_v29 = vadd.f32 %v1332_v43, %v1268_v8  ;;  %v1288_v11 = vpop.f32.mrf.mxu0  ;;  %v1342_v53 = vadd.f32 %v1341_v26, %v1277_v50 }
 0x24a   : > { %v1289_v26 = vadd.f32 %v1288_v11, %v3908_v14 }
 0x24b   : > { %1624 = vmatmul.f32.gmra.mxu0 %v1528_v28  ;;  %v1174_v34 = vadd.f32 %v3858_v55, %v1109_v59  ;;  %v1729_v55 = vld [vmem:[#allocation11 + $0x58] sm:$0xff]  ;;  %v1177_v2 = vadd.f32 %v3872_v6, %v1112_v36  ;;  %v1398_v44 = vadd.f32 %v1397_v27, %v1333_v29  ;;  %v1347_v23 = vpop.f32.mrf.mxu1  ;;  %v1723_v36 = vld [vmem:[#allocation11 + $0x28] sm:$0xff] }
 0x24c   : > { %v1241_v51 = vpop.f32.mrf.mxu3  ;;  %1742 = vmatpush.msrb.mxu2 %v1729_v55 }
 0x24d   : > { %v1239_v19 = vadd.f32 %v1238_v21, %v1174_v34  ;;  %v1242_v18 = vadd.f32 %v1241_v51, %v1177_v2  ;;  %v1274_v21 = vadd.f32 %v3892_v3, %v3908_v14  ;;  %v1345_v34 = vadd.f32 %v1344_v12, %v1280_v56 }
 0x24e   : > { %1743 = vmatpush.msrb.mxu2 %v1728_v61 }
 0x24f   : > { %v1532_v1 = vmax.f32 %v1239_v19, 0.0  ;;  %v1403_v49 = vpop.f32.mrf.mxu2  ;;  %v1534_v20 = vmax.f32 %v1242_v18, 0.0  ;;  %v1339_v27 = vadd.f32 %v1338_v35, %v1274_v21  ;;  %v1348_v35 = vadd.f32 %v1347_v23, %v1283_v7 }
 0x250   : > { %1744 = vmatpush.msrb.mxu2 %v1727_v38 }
 0x251   : > { %v1404_v22 = vadd.f32 %v1403_v49, %v1339_v27  ;;  %v1291_v51 = vpop.f32.mrf.mxu0 }
 0x252   : > { %1745 = vmatpush.msrb.mxu2 %v1726_v46  ;;  %v1292_v13 = vadd.f32 %v1291_v51, %v3908_v14 }
 0x253   : > { %1627 = vmatmul.f32.gmra.mxu0 %v1530_v33  ;;  %v1350_v16 = vpop.f32.mrf.mxu1 }
 0x254   : > { %v1456_v15 = vpop.f32.mrf.mxu3  ;;  %1746 = vmatpush.msrb.mxu2 %v1725_v62 }
 0x255   : > { %v1457_v24 = vadd.f32 %v1456_v15, %v1392_v0  ;;  %v1724_v15 = vld [vmem:[#allocation11 + $0x30] sm:$0xff] }
 0x256   : > { %1747 = vmatpush.msrb.mxu2 %v1724_v15 }
 0x257   : > { %v1505_v42 = vmax.f32 %v1457_v24, 0.0  ;;  %v1406_v6 = vpop.f32.mrf.mxu2 }
 0x258   : > { %v1407_v3 = vadd.f32 %v1406_v6, %v1342_v53  ;;  %1748 = vmatpush.msrb.mxu2 %v1723_v36 }
 0x259   : > { %1653 = vmatmul.f32.vlgmr.msrb.gmra.mxu1 %v1505_v42  ;;  %v1294_v0 = vpop.f32.mrf.mxu0 }
 0x25b   : > { %1630 = vmatmul.f32.gmra.mxu0 %v1532_v1  ;;  %v1353_v5 = vpop.f32.mrf.mxu1 }
 0x25c   : > { %v1459_v58 = vpop.f32.mrf.mxu3  ;;  %v1354_v6 = vadd.f32 %v1353_v5, %v1289_v26 }
 0x25d   : > { %v1460_v25 = vadd.f32 %v1459_v58, %v1395_v45  ;;  %v1286_v45 = vadd.f32 %v3929_v37, %v3908_v14 }
 0x25f   : > { %v1507_v31 = vmax.f32 %v1460_v25, 0.0  ;;  %v1409_v43 = vpop.f32.mrf.mxu2  ;;  %v1351_v18 = vadd.f32 %v1350_v16, %v1286_v45  ;;  %v1722_v25 = vld [vmem:[#allocation11 + $0x20] sm:$0xff] }
 0x260   : > { %v1410_v19 = vadd.f32 %v1409_v43, %v1345_v34  ;;  %1749 = vmatpush.msrb.mxu2 %v1722_v25 }
 0x261   : > { %1656 = vmatmul.f32.gmra.mxu1 %v1507_v31  ;;  %v1297_v48 = vpop.f32.mrf.mxu0 }
 0x263   : > { %1633 = vmatmul.f32.gmra.mxu0 %v1534_v20  ;;  %v1356_v8 = vpop.f32.mrf.mxu1 }
 0x264   : > { %v1462_v30 = vpop.f32.mrf.mxu3 }
 0x265   : > { %v1463_v47 = vadd.f32 %v1462_v30, %v1398_v44  ;;  %v1721_v30 = vld [vmem:[#allocation11 + $0x18] sm:$0xff] }
 0x266   : > { %1750 = vmatpush.msrb.mxu2 %v1721_v30 }
 0x267   : > { %v1509_v57 = vmax.f32 %v1463_v47, 0.0  ;;  %v1412_v41 = vpop.f32.mrf.mxu2 }
 0x268   : > { %v1413_v1 = vadd.f32 %v1412_v41, %v1348_v35  ;;  %v1298_v41 = vadd.f32 %v1297_v48, %v3908_v14 }
 0x269   : > { %1659 = vmatmul.f32.gmra.mxu1 %v1509_v57  ;;  %v1300_v29 = vpop.f32.mrf.mxu0 }
 0x26b   : > { %v1359_v57 = vpop.f32.mrf.mxu1 }
 0x26c   : > { %v1465_v63 = vpop.f32.mrf.mxu3 }
 0x26d   : > { %v1466_v10 = vadd.f32 %v1465_v63, %v1401_v39  ;;  %v1357_v63 = vadd.f32 %v1356_v8, %v1292_v13 }
 0x26f   : > { %v1511_v9 = vmax.f32 %v1466_v10, 0.0  ;;  %v1415_v40 = vpop.f32.mrf.mxu2  ;;  %v1720_v10 = vld [vmem:[#allocation11 + $0x10] sm:$0xff] }
 0x270   : > { %v1416_v4 = vadd.f32 %v1415_v40, %v1351_v18  ;;  %1751 = vmatpush.msrb.mxu2 %v1720_v10 }
 0x271   : > { %1662 = vmatmul.f32.gmra.mxu1 %v1511_v9  ;;  %v1303_v38 = vpop.f32.mrf.mxu0  ;;  %v1295_v9 = vadd.f32 %v1294_v0, %v3908_v14  ;;  %v1301_v0 = vadd.f32 %v1300_v29, %v3908_v14 }
 0x272   : > { %v1304_v36 = vadd.f32 %v1303_v38, %v3908_v14 }
 0x273   : > { %v1362_v46 = vpop.f32.mrf.mxu1 }
 0x274   : > { %v1468_v52 = vpop.f32.mrf.mxu3  ;;  %v1363_v62 = vadd.f32 %v1362_v46, %v1298_v41 }
 0x275   : > { %v1469_v28 = vadd.f32 %v1468_v52, %v1404_v22  ;;  %v1360_v52 = vadd.f32 %v1359_v57, %v1295_v9 }
 0x277   : > { %v1513_v17 = vmax.f32 %v1469_v28, 0.0  ;;  %v1418_v55 = vpop.f32.mrf.mxu2  ;;  %v1719_v28 = vld [vmem:[#allocation11 + $0x8] sm:$0xff] }
 0x278   : > { %v1419_v47 = vadd.f32 %v1418_v55, %v1354_v6  ;;  %1752 = vmatpush.msrb.mxu2 %v1719_v28 }
 0x279   : > { %1665 = vmatmul.f32.gmra.mxu1 %v1513_v17  ;;  %v1306_v22 = vpop.f32.mrf.mxu0 }
 0x27a   : > { %v1307_v45 = vadd.f32 %v1306_v22, %v3908_v14 }
 0x27c   : > { %v1471_v32 = vpop.f32.mrf.mxu3 }
 0x27d   : > { %v1472_v59 = vadd.f32 %v1471_v32, %v1407_v3  ;;  %v1718_v3 = vld [vmem:[#allocation11] sm:$0xff]  ;;  %v1365_v32 = vpop.f32.mrf.mxu1 }
 0x27e   : > { %1753 = vmatpush.msrb.mxu2 %v1718_v3  ;;  %v1366_v40 = vadd.f32 %v1365_v32, %v1301_v0 }
 0x27f   : > { %v1515_v33 = vmax.f32 %v1472_v59, 0.0  ;;  %v1421_v61 = vpop.f32.mrf.mxu2 }
 0x280   : > { %v1422_v43 = vadd.f32 %v1421_v61, %v1357_v63  ;;  %v3953_v61 = vld [vmem:[%s4052_s6] ss:$0 sm:$0xff] }
 0x281   : > { %1668 = vmatmul.f32.gmra.mxu1 %v1515_v33  ;;  %v1589_v59 = vpop.f32.mrf.mxu0 }
 0x284   : > { %v1474_v24 = vpop.f32.mrf.mxu3 }
 0x285   : > { %v1475_v60 = vadd.f32 %v1474_v24, %v1410_v19  ;;  %v1368_v24 = vpop.f32.mrf.mxu1 }
 0x286   : > { %v1369_v48 = vadd.f32 %v1368_v24, %v1304_v36 }
 0x287   : > { %v1517_v42 = vmax.f32 %v1475_v60, 0.0  ;;  %v1424_v12 = vpop.f32.mrf.mxu2 }
 0x288   : > { %v1425_v50 = vadd.f32 %v1424_v12, %v1360_v52 }
 0x289   : > { %1671 = vmatmul.f32.gmra.mxu1 %v1517_v42  ;;  %v1592_v42 = vpop.f32.mrf.mxu0 }
 0x28c   : > { %v1477_v49 = vpop.f32.mrf.mxu3 }
 0x28d   : > { %v1478_v2 = vadd.f32 %v1477_v49, %v1413_v1 }
 0x28f   : > { %v1519_v58 = vmax.f32 %v1478_v2, 0.0  ;;  %v1427_v23 = vpop.f32.mrf.mxu2  ;;  %v1371_v2 = vpop.f32.mrf.mxu1 }
 0x290   : > { %v1428_v56 = vadd.f32 %v1427_v23, %v1363_v62 }
 0x291   : > { %1674 = vmatmul.f32.gmra.mxu1 %v1519_v58  ;;  %v1595_v18 = vpop.f32.mrf.mxu0 }
 0x292   : > { %v1596_v38 = vadd.f32 %v3953_v61, %v1595_v18 }
 0x294   : > { %v1480_v31 = vpop.f32.mrf.mxu3 }
 0x295   : > { %v1481_v20 = vadd.f32 %v1480_v31, %v1416_v4  ;;  %v1372_v4 = vadd.f32 %v1371_v2, %v1307_v45 }
 0x297   : > { %v1521_v44 = vmax.f32 %v1481_v20, 0.0  ;;  %v1430_v33 = vpop.f32.mrf.mxu2 }
 0x298   : > { %v1431_v19 = vadd.f32 %v1430_v33, %v1366_v40 }
 0x299   : > { %1677 = vmatmul.f32.gmra.mxu1 %v1521_v44  ;;  %v1598_v26 = vpop.f32.mrf.mxu0  ;;  %v1590_v44 = vadd.f32 %v3953_v61, %v1589_v59 }
 0x29c   : > { %v1483_v37 = vpop.f32.mrf.mxu3 }
 0x29d   : > { %v1484_v54 = vadd.f32 %v1483_v37, %v1419_v47  ;;  %v1593_v37 = vadd.f32 %v3953_v61, %v1592_v42 }
 0x29f   : > { %v1523_v39 = vmax.f32 %v1484_v54, 0.0  ;;  %v1433_v35 = vpop.f32.mrf.mxu2 }
 0x2a0   : > { %v1434_v1 = vadd.f32 %v1433_v35, %v1369_v48 }
 0x2a1   : > { %1680 = vmatmul.f32.gmra.mxu1 %v1523_v39  ;;  %v1601_v47 = vpop.f32.mrf.mxu0 }
 0x2a2   : > { %v1602_v46 = vadd.f32 %v3953_v61, %v1601_v47 }
 0x2a4   : > { %v1486_v11 = vpop.f32.mrf.mxu3 }
 0x2a5   : > { %v1487_v21 = vadd.f32 %v1486_v11, %v1422_v43  ;;  %v1599_v43 = vadd.f32 %v3953_v61, %v1598_v26 }
 0x2a7   : > { %v1525_v27 = vmax.f32 %v1487_v21, 0.0  ;;  %v1436_v25 = vpop.f32.mrf.mxu2 }
 0x2a8   : > { %v1437_v8 = vadd.f32 %v1436_v25, %v1372_v4 }
 0x2a9   : > { %1683 = vmatmul.f32.gmra.mxu1 %v1525_v27  ;;  %v1604_v39 = vpop.f32.mrf.mxu0 }
 0x2ac   : > { %v1489_v51 = vpop.f32.mrf.mxu3 }
 0x2ad   : > { %v1490_v17 = vadd.f32 %v1489_v51, %v1425_v50  ;;  %v1605_v50 = vadd.f32 %v3953_v61, %v1604_v39 }
 0x2af   : > { %v1527_v53 = vmax.f32 %v1490_v17, 0.0 }
 0x2b1   : > { %1686 = vmatmul.f32.gmra.mxu1 %v1527_v53  ;;  %v1607_v9 = vpop.f32.mrf.mxu0 }
 0x2b2   : > { %v1608_v62 = vadd.f32 %v3953_v61, %v1607_v9 }
 0x2b4   : > { %v1492_v16 = vpop.f32.mrf.mxu3 }
 0x2b5   : > { %v1493_v34 = vadd.f32 %v1492_v16, %v1428_v56 }
 0x2b7   : > { %v1529_v15 = vmax.f32 %v1493_v34, 0.0 }
 0x2b9   : > { %1689 = vmatmul.f32.gmra.mxu1 %v1529_v15  ;;  %v1610_v23 = vpop.f32.mrf.mxu0 }
 0x2ba   : > { %v1611_v56 = vadd.f32 %v3953_v61, %v1610_v23 }
 0x2bc   : > { %v1495_v60 = vpop.f32.mrf.mxu3 }
 0x2bd   : > { %v1496_v7 = vadd.f32 %v1495_v60, %v1431_v19 }
 0x2bf   : > { %v1531_v5 = vmax.f32 %v1496_v7, 0.0 }
 0x2c1   : > { %1692 = vmatmul.f32.gmra.mxu1 %v1531_v5  ;;  %v1613_v53 = vpop.f32.mrf.mxu0 }
 0x2c2   : > { %v1614_v15 = vadd.f32 %v3953_v61, %v1613_v53 }
 0x2c4   : > { %v1498_v55 = vpop.f32.mrf.mxu3 }
 0x2c5   : > { %v1499_v49 = vadd.f32 %v1498_v55, %v1434_v1 }
 0x2c7   : > { %v1533_v58 = vmax.f32 %v1499_v49, 0.0 }
 0x2c9   : > { %1695 = vmatmul.f32.gmra.mxu1 %v1533_v58  ;;  %v1616_v33 = vpop.f32.mrf.mxu0 }
 0x2ca   : > { %v1617_v7 = vadd.f32 %v3953_v61, %v1616_v33 }
 0x2cc   : > { %v1501_v31 = vpop.f32.mrf.mxu3 }
 0x2cd   : > { %v1502_v29 = vadd.f32 %v1501_v31, %v1437_v8 }
 0x2cf   : > { %v1535_v20 = vmax.f32 %v1502_v29, 0.0 }
 0x2d1   : > { %1698 = vmatmul.f32.gmra.mxu1 %v1535_v20  ;;  %v1619_v24 = vpop.f32.mrf.mxu0 }
 0x2d2   : > { %v1620_v48 = vadd.f32 %v3953_v61, %v1619_v24 }
 0x2d6   : > { %v1654_v6 = vpop.f32.mrf.mxu1 }
 0x2d7   : > { %v1655_v14 = vadd.f32 %v1654_v6, %v1590_v44 }
 0x2d9   : > { %v1702_v30 = vmax.f32 %v1655_v14, 0.0  ;;  %v1622_v5 = vpop.f32.mrf.mxu0 }
 0x2da   : > { %v1623_v45 = vadd.f32 %v3953_v61, %v1622_v5 }
 0x2db   : > { %1754 = vmatmul.f32.vlgmr.msrb.gmra.mxu2 %v1702_v30 }
 0x2de   : > { %v1657_v54 = vpop.f32.mrf.mxu1 }
 0x2df   : > { %v1658_v57 = vadd.f32 %v1657_v54, %v1593_v37 }
 0x2e1   : > { %v1703_v13 = vmax.f32 %v1658_v57, 0.0  ;;  %v1625_v2 = vpop.f32.mrf.mxu0 }
 0x2e2   : > { %v1626_v4 = vadd.f32 %v3953_v61, %v1625_v2 }
 0x2e3   : > { %1757 = vmatmul.f32.gmra.mxu2 %v1703_v13 }
 0x2e6   : > { %v1660_v12 = vpop.f32.mrf.mxu1 }
 0x2e7   : > { %v1661_v63 = vadd.f32 %v1660_v12, %v1596_v38 }
 0x2e9   : > { %v1704_v10 = vmax.f32 %v1661_v63, 0.0  ;;  %v1628_v8 = vpop.f32.mrf.mxu0 }
 0x2ea   : > { %v1629_v26 = vadd.f32 %v3953_v61, %v1628_v8 }
 0x2eb   : > { %1760 = vmatmul.f32.gmra.mxu2 %v1704_v10  ;;  %v3974_v10 = vld [vmem:[%s4054_s8] ss:$0 sm:$0xff] }
 0x2ee   : > { %v1663_v11 = vpop.f32.mrf.mxu1 }
 0x2ef   : > { %v1664_v21 = vadd.f32 %v1663_v11, %v1599_v43 }
 0x2f1   : > { %v1705_v27 = vmax.f32 %v1664_v21, 0.0  ;;  %v1631_v14 = vpop.f32.mrf.mxu0 }
 0x2f2   : > { %v1632_v47 = vadd.f32 %v3953_v61, %v1631_v14 }
 0x2f3   : > { %1763 = vmatmul.f32.gmra.mxu2 %v1705_v27 }
 0x2f6   : > { %v1666_v22 = vpop.f32.mrf.mxu1 }
 0x2f7   : > { %v1667_v52 = vadd.f32 %v1666_v22, %v1602_v46 }
 0x2f9   : > { %v1706_v28 = vmax.f32 %v1667_v52, 0.0  ;;  %v1634_v13 = vpop.f32.mrf.mxu0 }
 0x2fa   : > { %v1635_v38 = vadd.f32 %v3953_v61, %v1634_v13 }
 0x2fb   : > { %1766 = vmatmul.f32.gmra.mxu2 %v1706_v28 }
 0x2fe   : > { %v1669_v51 = vpop.f32.mrf.mxu1 }
 0x2ff   : > { %v1670_v17 = vadd.f32 %v1669_v51, %v1605_v50 }
 0x301   : > { %v1707_v41 = vmax.f32 %v1670_v17, 0.0 }
 0x303   : > { %1769 = vmatmul.f32.gmra.mxu2 %v1707_v41 }
 0x306   : > { %v1672_v3 = vpop.f32.mrf.mxu1 }
 0x307   : > { %v1673_v32 = vadd.f32 %v1672_v3, %v1608_v62 }
 0x309   : > { %v1708_v59 = vmax.f32 %v1673_v32, 0.0 }
 0x30b   : > { %1772 = vmatmul.f32.gmra.mxu2 %v1708_v59 }
 0x30e   : > { %v1675_v16 = vpop.f32.mrf.mxu1 }
 0x30f   : > { %v1676_v34 = vadd.f32 %v1675_v16, %v1611_v56 }
 0x311   : > { %v1709_v0 = vmax.f32 %v1676_v34, 0.0 }
 0x313   : > { %1775 = vmatmul.f32.gmra.mxu2 %v1709_v0 }
 0x316   : > { %v1678_v40 = vpop.f32.mrf.mxu1 }
 0x317   : > { %v1679_v19 = vadd.f32 %v1678_v40, %v1614_v15 }
 0x319   : > { %v1710_v60 = vmax.f32 %v1679_v19, 0.0 }
 0x31b   : > { %1778 = vmatmul.f32.gmra.mxu2 %v1710_v60 }
 0x31e   : > { %v1681_v42 = vpop.f32.mrf.mxu1 }
 0x31f   : > { %v1682_v35 = vadd.f32 %v1681_v42, %v1617_v7 }
 0x321   : > { %v1711_v36 = vmax.f32 %v1682_v35, 0.0 }
 0x323   : > { %1781 = vmatmul.f32.gmra.mxu2 %v1711_v36 }
 0x326   : > { %v1684_v1 = vpop.f32.mrf.mxu1 }
 0x327   : > { %v1685_v55 = vadd.f32 %v1684_v1, %v1620_v48 }
 0x329   : > { %v1712_v49 = vmax.f32 %v1685_v55, 0.0 }
 0x32b   : > { %1784 = vmatmul.f32.gmra.mxu2 %v1712_v49 }
 0x32e   : > { %v1687_v58 = vpop.f32.mrf.mxu1 }
 0x32f   : > { %v1688_v18 = vadd.f32 %v1687_v58, %v1623_v45 }
 0x331   : > { %v1713_v25 = vmax.f32 %v1688_v18, 0.0 }
 0x333   : > { %1787 = vmatmul.f32.gmra.mxu2 %v1713_v25 }
 0x336   : > { %v1690_v31 = vpop.f32.mrf.mxu1 }
 0x337   : > { %v1691_v29 = vadd.f32 %v1690_v31, %v1626_v4 }
 0x339   : > { %v1714_v20 = vmax.f32 %v1691_v29, 0.0 }
 0x33b   : > { %1790 = vmatmul.f32.gmra.mxu2 %v1714_v20 }
 0x33e   : > { %v1693_v44 = vpop.f32.mrf.mxu1 }
 0x33f   : > { %v1694_v6 = vadd.f32 %v1693_v44, %v1629_v26 }
 0x341   : > { %v1715_v30 = vmax.f32 %v1694_v6, 0.0 }
 0x343   : > { %1793 = vmatmul.f32.gmra.mxu2 %v1715_v30 }
 0x346   : > { %v1696_v37 = vpop.f32.mrf.mxu1 }
 0x347   : > { %v1697_v54 = vadd.f32 %v1696_v37, %v1632_v47 }
 0x349   : > { %v1716_v57 = vmax.f32 %v1697_v54, 0.0 }
 0x34b   : > { %1796 = vmatmul.f32.gmra.mxu2 %v1716_v57 }
 0x34e   : > { %v1699_v39 = vpop.f32.mrf.mxu1 }
 0x34f   : > { %v1700_v12 = vadd.f32 %v1699_v39, %v1635_v38 }
 0x351   : > { %v1717_v63 = vmax.f32 %v1700_v12, 0.0 }
 0x353   : > { %1799 = vmatmul.f32.gmra.mxu2 %v1717_v63 }
 0x35e   : > { %v1755_v43 = vpop.f32.mrf.mxu2 }
 0x35f   : > { %v1756_v11 = vadd.f32 %v3974_v10, %v1755_v43 }
 0x361   : > { %v2279_v21 = vmul.f32 -1.442695, %v1756_v11 }
 0x363   : > { %2457 = vpow2.f32 %v2279_v21 }
 0x366   : > { %v1758_v9 = vpop.f32.mrf.mxu2 }
 0x367   : > { %v1759_v27 = vadd.f32 %v3974_v10, %v1758_v9 }
 0x369   : > { %v2458_v46 = vpop.eup %2457  ;;  %v2280_v22 = vmul.f32 -1.442695, %v1759_v27 }
 0x36a   : > { %v1851_v61 = vadd.f32 1.0, %v2458_v46 }
 0x36b   : > { %2459 = vpow2.f32 %v2280_v22 }
 0x36c   : > { %2461 = vrcp.f32 %v1851_v61  ;;  %v1878_v62 = vand.u32 2147483648, %v1851_v61  ;;  %v1876_v59 = vand.u32 2147483647, %v1851_v61  ;;  %vm1872_vm1 = vweird.f32 %v1851_v61 }
 0x36e   : > { %v1761_v52 = vpop.f32.mrf.mxu2  ;;  %v1879_v15 = vor.u32 1.1754944e-38, %v1878_v62  ;;  %vm1877_vm3 = vcmp.eq.f32.partialorder %v1876_v59, 8.507059e+37 }
 0x36f   : > { %v1762_v28 = vadd.f32 %v3974_v10, %v1761_v52 }
 0x371   : > { %v2460_v23 = vpop.eup %2459  ;;  %v2281_v50 = vmul.f32 -1.442695, %v1762_v28 }
 0x372   : > { %v2462_v51 = vpop.eup %2461  ;;  %v1852_v17 = vadd.f32 1.0, %v2460_v23 }
 0x373   : > { %v1868_v41 = vmul.f32 %v2462_v51, %v1851_v61  ;;  %2463 = vpow2.f32 %v2281_v50  ;;  %vm1873_vm0 = vweird.f32 %v2462_v51 }
 0x374   : > { %2465 = vrcp.f32 %v1852_v17  ;;  %vm1874_vm2 = vmor %vm1872_vm1, %vm1873_vm0  ;;  %v1893_v42 = vand.u32 2147483648, %v1852_v17  ;;  %v1891_v5 = vand.u32 2147483647, %v1852_v17  ;;  %vm1887_vm5 = vweird.f32 %v1852_v17 }
 0x375   : > { %v1869_v53 = vsub.f32 1.0, %v1868_v41 }
 0x376   : > { %v1764_v3 = vpop.f32.mrf.mxu2  ;;  %v1894_v45 = vor.u32 1.1754944e-38, %v1893_v42  ;;  %vm1892_vm7 = vcmp.eq.f32.partialorder %v1891_v5, 8.507059e+37 }
 0x377   : > { %v1870_v32 = vmul.f32 %v2462_v51, %v1869_v53  ;;  %v1765_v56 = vadd.f32 %v3974_v10, %v1764_v3 }
 0x379   : > { %v2464_v33 = vpop.eup %2463  ;;  %v1871_v16 = vadd.f32 %v2462_v51, %v1870_v32  ;;  %v2282_v34 = vmul.f32 -1.442695, %v1765_v56 }
 0x37a   : > { %v2466_v0 = vpop.eup %2465  ;;  %v1853_v40 = vadd.f32 1.0, %v2464_v33 }
 0x37b   : > { %v1875_v19 = vsel %vm1874_vm2, %v2462_v51, %v1871_v16  ;;  %v1883_v24 = vmul.f32 %v2466_v0, %v1852_v17  ;;  %2467 = vpow2.f32 %v2282_v34  ;;  %vm1888_vm4 = vweird.f32 %v2466_v0 }
 0x37c   : > { %v1880_v60 = vsel %vm1877_vm3, %v1879_v15, %v1875_v19  ;;  %2469 = vrcp.f32 %v1853_v40  ;;  %vm1889_vm6 = vmor %vm1887_vm5, %vm1888_vm4  ;;  %v1908_v31 = vand.u32 2147483648, %v1853_v40  ;;  %v1906_v26 = vand.u32 2147483647, %v1853_v40 }
 0x37d   : > { %2107 = vst [vmem:[%s3982_s1] sm:$0xff] %v1880_v60  ;;  %v1884_v7 = vsub.f32 1.0, %v1883_v24  ;;  %vm1902_vm9 = vweird.f32 %v1853_v40 }
 0x37e   : > { %v1767_v35 = vpop.f32.mrf.mxu2  ;;  %v1909_v37 = vor.u32 1.1754944e-38, %v1908_v31  ;;  %vm1907_vm11 = vcmp.eq.f32.partialorder %v1906_v26, 8.507059e+37 }
 0x37f   : > { %v1885_v36 = vmul.f32 %v2466_v0, %v1884_v7  ;;  %v1768_v48 = vadd.f32 %v3974_v10, %v1767_v35 }
 0x381   : > { %v2468_v1 = vpop.eup %2467  ;;  %v1886_v55 = vadd.f32 %v2466_v0, %v1885_v36  ;;  %v2283_v49 = vmul.f32 -1.442695, %v1768_v48 }
 0x382   : > { %v2470_v2 = vpop.eup %2469  ;;  %v1854_v58 = vadd.f32 1.0, %v2468_v1 }
 0x383   : > { %v1890_v18 = vsel %vm1889_vm6, %v2466_v0, %v1886_v55  ;;  %v1898_v25 = vmul.f32 %v2470_v2, %v1853_v40  ;;  %2471 = vpow2.f32 %v2283_v49  ;;  %vm1903_vm8 = vweird.f32 %v2470_v2 }
 0x384   : > { %v1895_v4 = vsel %vm1892_vm7, %v1894_v45, %v1890_v18  ;;  %2473 = vrcp.f32 %v1854_v58  ;;  %vm1904_vm10 = vmor %vm1902_vm9, %vm1903_vm8  ;;  %v1923_v12 = vand.u32 2147483648, %v1854_v58  ;;  %v1921_v11 = vand.u32 2147483647, %v1854_v58 }
 0x385   : > { %2108 = vst [vmem:[%s3982_s1 + $0x8] sm:$0xff] %v1895_v4  ;;  %v1899_v8 = vsub.f32 1.0, %v1898_v25  ;;  %vm1917_vm13 = vweird.f32 %v1854_v58 }
 0x386   : > { %v1770_v29 = vpop.f32.mrf.mxu2  ;;  %v1924_v61 = vor.u32 1.1754944e-38, %v1923_v12  ;;  %vm1922_vm15 = vcmp.eq.f32.partialorder %v1921_v11, 8.507059e+37 }
 0x387   : > { %v1900_v20 = vmul.f32 %v2470_v2, %v1899_v8  ;;  %v1771_v44 = vadd.f32 %v3974_v10, %v1770_v29 }
 0x389   : > { %v2472_v6 = vpop.eup %2471  ;;  %v1901_v14 = vadd.f32 %v2470_v2, %v1900_v20  ;;  %v2284_v30 = vmul.f32 -1.442695, %v1771_v44 }
 0x38a   : > { %v2474_v47 = vpop.eup %2473  ;;  %v1855_v54 = vadd.f32 1.0, %v2472_v6 }
 0x38b   : > { %v1905_v57 = vsel %vm1904_vm10, %v2470_v2, %v1901_v14  ;;  %v1913_v13 = vmul.f32 %v2474_v47, %v1854_v58  ;;  %2475 = vpow2.f32 %v2284_v30  ;;  %vm1918_vm12 = vweird.f32 %v2474_v47 }
 0x38c   : > { %v1910_v38 = vsel %vm1907_vm11, %v1909_v37, %v1905_v57  ;;  %2477 = vrcp.f32 %v1855_v54  ;;  %vm1919_vm14 = vmor %vm1917_vm13, %vm1918_vm12  ;;  %v1938_v17 = vand.u32 2147483648, %v1855_v54  ;;  %v1936_v62 = vand.u32 2147483647, %v1855_v54 }
 0x38d   : > { %2109 = vst [vmem:[%s3982_s1 + $0x10] sm:$0xff] %v1910_v38  ;;  %v1914_v39 = vsub.f32 1.0, %v1913_v13  ;;  %vm1932_vm1 = vweird.f32 %v1855_v54 }
 0x38e   : > { %v1773_v63 = vpop.f32.mrf.mxu2  ;;  %v1939_v16 = vor.u32 1.1754944e-38, %v1938_v17  ;;  %vm1937_vm3 = vcmp.eq.f32.partialorder %v1936_v62, 8.507059e+37 }
 0x38f   : > { %v1915_v43 = vmul.f32 %v2474_v47, %v1914_v39  ;;  %v1774_v21 = vadd.f32 %v3974_v10, %v1773_v63 }
 0x391   : > { %v2476_v9 = vpop.eup %2475  ;;  %v1916_v27 = vadd.f32 %v2474_v47, %v1915_v43  ;;  %v2285_v46 = vmul.f32 -1.442695, %v1774_v21 }
 0x392   : > { %v2478_v22 = vpop.eup %2477  ;;  %v1856_v52 = vadd.f32 1.0, %v2476_v9 }
 0x393   : > { %v1920_v28 = vsel %vm1919_vm14, %v2474_v47, %v1916_v27  ;;  %v1928_v23 = vmul.f32 %v2478_v22, %v1855_v54  ;;  %2479 = vpow2.f32 %v2285_v46  ;;  %vm1933_vm0 = vweird.f32 %v2478_v22 }
 0x394   : > { %v1925_v50 = vsel %vm1922_vm15, %v1924_v61, %v1920_v28  ;;  %2481 = vrcp.f32 %v1856_v52  ;;  %vm1934_vm2 = vmor %vm1932_vm1, %vm1933_vm0  ;;  %v1953_v24 = vand.u32 2147483648, %v1856_v52  ;;  %v1951_v42 = vand.u32 2147483647, %v1856_v52 }
 0x395   : > { %2110 = vst [vmem:[%s3982_s1 + $0x18] sm:$0xff] %v1925_v50  ;;  %v1929_v51 = vsub.f32 1.0, %v1928_v23  ;;  %vm1947_vm5 = vweird.f32 %v1856_v52 }
 0x396   : > { %v1776_v41 = vpop.f32.mrf.mxu2  ;;  %v1954_v55 = vor.u32 1.1754944e-38, %v1953_v24  ;;  %vm1952_vm7 = vcmp.eq.f32.partialorder %v1951_v42, 8.507059e+37 }
 0x397   : > { %v1930_v53 = vmul.f32 %v2478_v22, %v1929_v51  ;;  %v1777_v3 = vadd.f32 %v3974_v10, %v1776_v41 }
 0x399   : > { %v2480_v32 = vpop.eup %2479  ;;  %v1931_v59 = vadd.f32 %v2478_v22, %v1930_v53  ;;  %v2286_v56 = vmul.f32 -1.442695, %v1777_v3 }
 0x39a   : > { %v2482_v33 = vpop.eup %2481  ;;  %v1857_v34 = vadd.f32 1.0, %v2480_v32 }
 0x39b   : > { %v1935_v0 = vsel %vm1934_vm2, %v2478_v22, %v1931_v59  ;;  %v1943_v15 = vmul.f32 %v2482_v33, %v1856_v52  ;;  %2483 = vpow2.f32 %v2286_v56  ;;  %vm1948_vm4 = vweird.f32 %v2482_v33 }
 0x39c   : > { %v1940_v40 = vsel %vm1937_vm3, %v1939_v16, %v1935_v0  ;;  %2485 = vrcp.f32 %v1857_v34  ;;  %vm1949_vm6 = vmor %vm1947_vm5, %vm1948_vm4  ;;  %v1968_v25 = vand.u32 2147483648, %v1857_v34  ;;  %v1966_v31 = vand.u32 2147483647, %v1857_v34 }
 0x39d   : > { %2111 = vst [vmem:[%s3982_s1 + $0x20] sm:$0xff] %v1940_v40  ;;  %v1944_v19 = vsub.f32 1.0, %v1943_v15  ;;  %vm1962_vm9 = vweird.f32 %v1857_v34 }
 0x39e   : > { %v1779_v60 = vpop.f32.mrf.mxu2  ;;  %v1969_v14 = vor.u32 1.1754944e-38, %v1968_v25  ;;  %vm1967_vm11 = vcmp.eq.f32.partialorder %v1966_v31, 8.507059e+37 }
 0x39f   : > { %v1945_v7 = vmul.f32 %v2482_v33, %v1944_v19  ;;  %v1780_v35 = vadd.f32 %v3974_v10, %v1779_v60 }
 0x3a1   : > { %v2484_v36 = vpop.eup %2483  ;;  %v1946_v5 = vadd.f32 %v2482_v33, %v1945_v7  ;;  %v2287_v48 = vmul.f32 -1.442695, %v1780_v35 }
 0x3a2   : > { %v2486_v1 = vpop.eup %2485  ;;  %v1858_v49 = vadd.f32 1.0, %v2484_v36 }
 0x3a3   : > { %v1950_v2 = vsel %vm1949_vm6, %v2482_v33, %v1946_v5  ;;  %v1958_v45 = vmul.f32 %v2486_v1, %v1857_v34  ;;  %2487 = vpow2.f32 %v2287_v48  ;;  %vm1963_vm8 = vweird.f32 %v2486_v1 }
 0x3a4   : > { %v1955_v58 = vsel %vm1952_vm7, %v1954_v55, %v1950_v2  ;;  %2489 = vrcp.f32 %v1858_v49  ;;  %vm1964_vm10 = vmor %vm1962_vm9, %vm1963_vm8  ;;  %v1983_v13 = vand.u32 2147483648, %v1858_v49  ;;  %v1981_v12 = vand.u32 2147483647, %v1858_v49 }
 0x3a5   : > { %2112 = vst [vmem:[%s3982_s1 + $0x28] sm:$0xff] %v1955_v58  ;;  %v1959_v18 = vsub.f32 1.0, %v1958_v45  ;;  %vm1977_vm13 = vweird.f32 %v1858_v49 }
 0x3a6   : > { %v1782_v4 = vpop.f32.mrf.mxu2  ;;  %v1984_v27 = vor.u32 1.1754944e-38, %v1983_v13  ;;  %vm1982_vm15 = vcmp.eq.f32.partialorder %v1981_v12, 8.507059e+37 }
 0x3a7   : > { %v1960_v8 = vmul.f32 %v2486_v1, %v1959_v18  ;;  %v1783_v29 = vadd.f32 %v3974_v10, %v1782_v4 }
 0x3a9   : > { %v2488_v20 = vpop.eup %2487  ;;  %v1961_v26 = vadd.f32 %v2486_v1, %v1960_v8  ;;  %v2288_v44 = vmul.f32 -1.442695, %v1783_v29 }
 0x3aa   : > { %v2490_v6 = vpop.eup %2489  ;;  %v1859_v30 = vadd.f32 1.0, %v2488_v20 }
 0x3ab   : > { %v1965_v47 = vsel %vm1964_vm10, %v2486_v1, %v1961_v26  ;;  %v1973_v37 = vmul.f32 %v2490_v6, %v1858_v49  ;;  %2491 = vpow2.f32 %v2288_v44  ;;  %vm1978_vm12 = vweird.f32 %v2490_v6 }
 0x3ac   : > { %v1970_v54 = vsel %vm1967_vm11, %v1969_v14, %v1965_v47  ;;  %2493 = vrcp.f32 %v1859_v30  ;;  %vm1979_vm14 = vmor %vm1977_vm13, %vm1978_vm12  ;;  %v1998_v23 = vand.u32 2147483648, %v1859_v30  ;;  %v1996_v17 = vand.u32 2147483647, %v1859_v30 }
 0x3ad   : > { %2113 = vst [vmem:[%s3982_s1 + $0x30] sm:$0xff] %v1970_v54  ;;  %v1974_v57 = vsub.f32 1.0, %v1973_v37  ;;  %vm1992_vm1 = vweird.f32 %v1859_v30 }
 0x3ae   : > { %v1785_v38 = vpop.f32.mrf.mxu2  ;;  %v1999_v59 = vor.u32 1.1754944e-38, %v1998_v23  ;;  %vm1997_vm3 = vcmp.eq.f32.partialorder %v1996_v17, 8.507059e+37 }
 0x3af   : > { %v1975_v39 = vmul.f32 %v2490_v6, %v1974_v57  ;;  %v1786_v63 = vadd.f32 %v3974_v10, %v1785_v38 }
 0x3b1   : > { %v2492_v43 = vpop.eup %2491  ;;  %v1976_v11 = vadd.f32 %v2490_v6, %v1975_v39  ;;  %v2289_v21 = vmul.f32 -1.442695, %v1786_v63 }
 0x3b2   : > { %v2494_v9 = vpop.eup %2493  ;;  %v1860_v46 = vadd.f32 1.0, %v2492_v43 }
 0x3b3   : > { %v1980_v22 = vsel %vm1979_vm14, %v2490_v6, %v1976_v11  ;;  %v1988_v61 = vmul.f32 %v2494_v9, %v1859_v30  ;;  %2495 = vpow2.f32 %v2289_v21  ;;  %vm1993_vm0 = vweird.f32 %v2494_v9 }
 0x3b4   : > { %v1985_v52 = vsel %vm1982_vm15, %v1984_v27, %v1980_v22  ;;  %2497 = vrcp.f32 %v1860_v46  ;;  %vm1994_vm2 = vmor %vm1992_vm1, %vm1993_vm0  ;;  %v2013_v15 = vand.u32 2147483648, %v1860_v46  ;;  %v2011_v24 = vand.u32 2147483647, %v1860_v46 }
 0x3b5   : > { %2114 = vst [vmem:[%s3982_s1 + $0x38] sm:$0xff] %v1985_v52  ;;  %v1989_v28 = vsub.f32 1.0, %v1988_v61  ;;  %vm2007_vm5 = vweird.f32 %v1860_v46 }
 0x3b6   : > { %v1788_v50 = vpop.f32.mrf.mxu2  ;;  %v2014_v5 = vor.u32 1.1754944e-38, %v2013_v15  ;;  %vm2012_vm7 = vcmp.eq.f32.partialorder %v2011_v24, 8.507059e+37 }
 0x3b7   : > { %v1990_v51 = vmul.f32 %v2494_v9, %v1989_v28  ;;  %v1789_v41 = vadd.f32 %v3974_v10, %v1788_v50 }
 0x3b9   : > { %v2496_v53 = vpop.eup %2495  ;;  %v1991_v62 = vadd.f32 %v2494_v9, %v1990_v51  ;;  %v2290_v3 = vmul.f32 -1.442695, %v1789_v41 }
 0x3ba   : > { %v2498_v32 = vpop.eup %2497  ;;  %v1861_v56 = vadd.f32 1.0, %v2496_v53 }
 0x3bb   : > { %v1995_v33 = vsel %vm1994_vm2, %v2494_v9, %v1991_v62  ;;  %v2003_v16 = vmul.f32 %v2498_v32, %v1860_v46  ;;  %2499 = vpow2.f32 %v2290_v3  ;;  %vm2008_vm4 = vweird.f32 %v2498_v32 }
 0x3bc   : > { %v2000_v34 = vsel %vm1997_vm3, %v1999_v59, %v1995_v33  ;;  %2501 = vrcp.f32 %v1861_v56  ;;  %vm2009_vm6 = vmor %vm2007_vm5, %vm2008_vm4  ;;  %v2028_v45 = vand.u32 2147483648, %v1861_v56  ;;  %v2026_v25 = vand.u32 2147483647, %v1861_v56 }
 0x3bd   : > { %2115 = vst [vmem:[%s3982_s1 + $0x40] sm:$0xff] %v2000_v34  ;;  %v2004_v0 = vsub.f32 1.0, %v2003_v16  ;;  %vm2022_vm9 = vweird.f32 %v1861_v56 }
 0x3be   : > { %v1791_v40 = vpop.f32.mrf.mxu2  ;;  %v2029_v26 = vor.u32 1.1754944e-38, %v2028_v45  ;;  %vm2027_vm11 = vcmp.eq.f32.partialorder %v2026_v25, 8.507059e+37 }
 0x3bf   : > { %v2005_v19 = vmul.f32 %v2498_v32, %v2004_v0  ;;  %v1792_v60 = vadd.f32 %v3974_v10, %v1791_v40 }
 0x3c1   : > { %v2500_v7 = vpop.eup %2499  ;;  %v2006_v42 = vadd.f32 %v2498_v32, %v2005_v19  ;;  %v2291_v35 = vmul.f32 -1.442695, %v1792_v60 }
 0x3c2   : > { %v2502_v36 = vpop.eup %2501  ;;  %v1862_v48 = vadd.f32 1.0, %v2500_v7 }
 0x3c3   : > { %v2010_v1 = vsel %vm2009_vm6, %v2498_v32, %v2006_v42  ;;  %v2018_v55 = vmul.f32 %v2502_v36, %v1861_v56  ;;  %2503 = vpow2.f32 %v2291_v35  ;;  %vm2023_vm8 = vweird.f32 %v2502_v36 }
 0x3c4   : > { %v2015_v49 = vsel %vm2012_vm7, %v2014_v5, %v2010_v1  ;;  %2505 = vrcp.f32 %v1862_v48  ;;  %vm2024_vm10 = vmor %vm2022_vm9, %vm2023_vm8  ;;  %v2043_v37 = vand.u32 2147483648, %v1862_v48  ;;  %v2041_v13 = vand.u32 2147483647, %v1862_v48 }
 0x3c5   : > { %2116 = vst [vmem:[%s3982_s1 + $0x48] sm:$0xff] %v2015_v49  ;;  %v2019_v2 = vsub.f32 1.0, %v2018_v55  ;;  %vm2037_vm13 = vweird.f32 %v1862_v48 }
 0x3c6   : > { %v1794_v58 = vpop.f32.mrf.mxu2  ;;  %v2044_v11 = vor.u32 1.1754944e-38, %v2043_v37  ;;  %vm2042_vm15 = vcmp.eq.f32.partialorder %v2041_v13, 8.507059e+37 }
 0x3c7   : > { %v2020_v18 = vmul.f32 %v2502_v36, %v2019_v2  ;;  %v1795_v4 = vadd.f32 %v3974_v10, %v1794_v58 }
 0x3c9   : > { %v2504_v8 = vpop.eup %2503  ;;  %v2021_v31 = vadd.f32 %v2502_v36, %v2020_v18  ;;  %v2292_v29 = vmul.f32 -1.442695, %v1795_v4 }
 0x3ca   : > { %v2506_v20 = vpop.eup %2505  ;;  %v1863_v44 = vadd.f32 1.0, %v2504_v8 }
 0x3cb   : > { %v2025_v6 = vsel %vm2024_vm10, %v2502_v36, %v2021_v31  ;;  %v2033_v14 = vmul.f32 %v2506_v20, %v1862_v48  ;;  %2507 = vpow2.f32 %v2292_v29  ;;  %vm2038_vm12 = vweird.f32 %v2506_v20 }
 0x3cc   : > { %v2030_v30 = vsel %vm2027_vm11, %v2029_v26, %v2025_v6  ;;  %2509 = vrcp.f32 %v1863_v44  ;;  %vm2039_vm14 = vmor %vm2037_vm13, %vm2038_vm12  ;;  %v2058_v61 = vand.u32 2147483648, %v1863_v44  ;;  %v2056_v23 = vand.u32 2147483647, %v1863_v44 }
 0x3cd   : > { %2117 = vst [vmem:[%s3982_s1 + $0x50] sm:$0xff] %v2030_v30  ;;  %v2034_v47 = vsub.f32 1.0, %v2033_v14  ;;  %vm2052_vm1 = vweird.f32 %v1863_v44 }
 0x3ce   : > { %v1797_v54 = vpop.f32.mrf.mxu2  ;;  %v2059_v62 = vor.u32 1.1754944e-38, %v2058_v61  ;;  %vm2057_vm3 = vcmp.eq.f32.partialorder %v2056_v23, 8.507059e+37 }
 0x3cf   : > { %v2035_v57 = vmul.f32 %v2506_v20, %v2034_v47  ;;  %v1798_v38 = vadd.f32 %v3974_v10, %v1797_v54 }
 0x3d1   : > { %v2508_v39 = vpop.eup %2507  ;;  %v2036_v12 = vadd.f32 %v2506_v20, %v2035_v57  ;;  %v2293_v63 = vmul.f32 -1.442695, %v1798_v38 }
 0x3d2   : > { %v2510_v43 = vpop.eup %2509  ;;  %v1864_v21 = vadd.f32 1.0, %v2508_v39 }
 0x3d3   : > { %v2040_v9 = vsel %vm2039_vm14, %v2506_v20, %v2036_v12  ;;  %v2048_v27 = vmul.f32 %v2510_v43, %v1863_v44  ;;  %2511 = vpow2.f32 %v2293_v63  ;;  %vm2053_vm0 = vweird.f32 %v2510_v43 }
 0x3d4   : > { %v2045_v46 = vsel %vm2042_vm15, %v2044_v11, %v2040_v9  ;;  %2513 = vrcp.f32 %v1864_v21  ;;  %vm2054_vm2 = vmor %vm2052_vm1, %vm2053_vm0  ;;  %v2073_v16 = vand.u32 2147483648, %v1864_v21  ;;  %vm2067_vm5 = vweird.f32 %v1864_v21 }
 0x3d5   : > { %2118 = vst [vmem:[%s3982_s1 + $0x58] sm:$0xff] %v2045_v46  ;;  %v2049_v22 = vsub.f32 1.0, %v2048_v27 }
 0x3d6   : > { %v1800_v52 = vpop.f32.mrf.mxu2  ;;  %v2074_v19 = vor.u32 1.1754944e-38, %v2073_v16 }
 0x3d7   : > { %v2050_v28 = vmul.f32 %v2510_v43, %v2049_v22  ;;  %v1801_v50 = vadd.f32 %v3974_v10, %v1800_v52  ;;  %v2071_v10 = vand.u32 2147483647, %v1864_v21 }
 0x3d9   : > { %v2512_v51 = vpop.eup %2511  ;;  %v2051_v17 = vadd.f32 %v2510_v43, %v2050_v28  ;;  %v2294_v41 = vmul.f32 -1.442695, %v1801_v50  ;;  %vm2072_vm7 = vcmp.eq.f32.partialorder %v2071_v10, 8.507059e+37 }
 0x3da   : > { %v2514_v53 = vpop.eup %2513  ;;  %v1865_v3 = vadd.f32 1.0, %v2512_v51 }
 0x3db   : > { %v2055_v32 = vsel %vm2054_vm2, %v2510_v43, %v2051_v17  ;;  %v2063_v59 = vmul.f32 %v2514_v53, %v1864_v21  ;;  %2515 = vpow2.f32 %v2294_v41  ;;  %vm2068_vm4 = vweird.f32 %v2514_v53 }
 0x3dc   : > { %v2060_v56 = vsel %vm2057_vm3, %v2059_v62, %v2055_v32  ;;  %2517 = vrcp.f32 %v1865_v3  ;;  %vm2069_vm6 = vmor %vm2067_vm5, %vm2068_vm4  ;;  %v2088_v36 = vand.u32 2147483648, %v1865_v3  ;;  %v2086_v48 = vand.u32 2147483647, %v1865_v3 }
 0x3dd   : > { %2119 = vst [vmem:[%s3982_s1 + $0x60] sm:$0xff] %v2060_v56  ;;  %v2064_v33 = vsub.f32 1.0, %v2063_v59  ;;  %vm2082_vm9 = vweird.f32 %v1865_v3 }
 0x3de   : > { %v2089_v49 = vor.u32 1.1754944e-38, %v2088_v36  ;;  %vm2087_vm11 = vcmp.eq.f32.partialorder %v2086_v48, 8.507059e+37 }
 0x3df   : > { %v2065_v34 = vmul.f32 %v2514_v53, %v2064_v33 }
 0x3e1   : > { %v2516_v0 = vpop.eup %2515  ;;  %v2066_v15 = vadd.f32 %v2514_v53, %v2065_v34 }
 0x3e2   : > { %v2518_v40 = vpop.eup %2517  ;;  %v1866_v24 = vadd.f32 1.0, %v2516_v0 }
 0x3e3   : > { %v2070_v60 = vsel %vm2069_vm6, %v2514_v53, %v2066_v15  ;;  %v2078_v7 = vmul.f32 %v2518_v40, %v1865_v3  ;;  %vm2083_vm8 = vweird.f32 %v2518_v40 }
 0x3e4   : > { %v2075_v42 = vsel %vm2072_vm7, %v2074_v19, %v2070_v60  ;;  %2519 = vrcp.f32 %v1866_v24  ;;  %vm2084_vm10 = vmor %vm2082_vm9, %vm2083_vm8  ;;  %v2103_v25 = vand.u32 2147483648, %v1866_v24  ;;  %v2101_v8 = vand.u32 2147483647, %v1866_v24 }
 0x3e5   : > { %2120 = vst [vmem:[%s3982_s1 + $0x68] sm:$0xff] %v2075_v42  ;;  %v2079_v35 = vsub.f32 1.0, %v2078_v7  ;;  %vm2097_vm13 = vweird.f32 %v1866_v24 }
 0x3e6   : > { %v2104_v29 = vor.u32 1.1754944e-38, %v2103_v25  ;;  %vm2102_vm15 = vcmp.eq.f32.partialorder %v2101_v8, 8.507059e+37 }
 0x3e7   : > { %v2080_v5 = vmul.f32 %v2518_v40, %v2079_v35 }
 0x3e9   : > { %v2081_v1 = vadd.f32 %v2518_v40, %v2080_v5 }
 0x3ea   : > { %v2520_v55 = vpop.eup %2519 }
 0x3eb   : > { %v2085_v2 = vsel %vm2084_vm10, %v2518_v40, %v2081_v1  ;;  %v2093_v45 = vmul.f32 %v2520_v55, %v1866_v24  ;;  %vm2098_vm12 = vweird.f32 %v2520_v55 }
 0x3ec   : > { %v2090_v58 = vsel %vm2087_vm11, %v2089_v49, %v2085_v2  ;;  %vm2099_vm14 = vmor %vm2097_vm13, %vm2098_vm12 }
 0x3ed   : > { %2121 = vst [vmem:[%s3982_s1 + $0x70] sm:$0xff] %v2090_v58  ;;  %v2094_v18 = vsub.f32 1.0, %v2093_v45 }
 0x3ef   : > { %v2095_v4 = vmul.f32 %v2520_v55, %v2094_v18 }
 0x3f1   : > { %v2096_v31 = vadd.f32 %v2520_v55, %v2095_v4 }
 0x3f3   : > { %v2100_v20 = vsel %vm2099_vm14, %v2520_v55, %v2096_v31 }
 0x3f4   : > { %v2105_v26 = vsel %vm2102_vm15, %v2104_v29, %v2100_v20 }
 0x3f5   : > { %2122 = vst [vmem:[%s3982_s1 + $0x78] sm:$0xff] %v2105_v26 }
 0x3f6   : > { %2728 = shalt.err (!%p2725_p9)
}
 0x3f7   : > { %s2792_s27 = smov 128   ;;  %s2793_s1 = smov 8  }
 0x3f8   : > { %2372 = dma.vmem_to_hbm [thread:$0]  (%p2936_p13), %s2137_s16, 2048, %s2139_s2, %s2124_s3, %s2792_s27, %s2792_s27, %s2793_s1  }
 0x3f9 PF: > { %s2153_s29 = sand.u32 1, %s2767_s30   ;;  %p4209_p10 = scmp.ge.s32.totalorder %s2779_s12, 2 }
 0x3fa   : > { %s2154_s13 = scalar_lea.sflag [#allocation4], %s2153_s29 }
 0x3fb   : > { %p2395_p11 = pnand %p4209_p10, %p2941_p4 }
 0x3fd   : > { %p2396_p0 = pneg %p2395_p11 }
 0x3ff   : > { %2762 = dma.done.wait (%p2396_p0), %s2154_s13, 2048  }
 0x400   : > { %2764 = vsyncadd (%p2396_p0), %s2154_s13, 4294965248  ;;  %p25_p2 = scmp.ge.s32.totalorder %s2916_s18, 4   ;;  %s4210_s30 = smov %s2771_s10 }
 0x401   : > { %s4211_s10 = smov %s2775_s11  ;;  %s4212_s11 = smov %s2928_s24 }
 0x402   : > { %s4213_s12 = smov %s2916_s18  ;;  %27 = sbr.rel (!%p25_p2) target bundleno = 12 (0xc), region = 121 }
 0x407   :  { %2160 = vsyncpa [#allocation3], 1 }
 0x408   :  { %2162 = vsyncpa [#allocation3 + $0x1], 1 }
 0x409   :  { %2163 = vsyncpa [#allocation6], 1 }
 0x40a   :  { %2164 = vsyncpa [#allocation9], 1 }
 0x40b   :  { %2165 = vsyncpa [#allocation12], 1 }
 0x40c   :  { %2166 = vsyncpa [#allocation4], 1 }
 0x40d   :  { %2168 = vsyncpa [#allocation4 + $0x1], 1 }

</bundles_post_ra>
